<compile_context>
chip_gen: v6e
topology: v6e:2x2x1
jax: 0.10.0
libtpu: 0.0.40
codegen_flags: <defaults>
</compile_context>

<pallas_src>
import functools

import jax
import jax.numpy as jnp
import numpy as np
from jax import lax
from jax.experimental import pallas as pl
from jax.experimental.pallas import tpu as pltpu


def _sepconv_kernel(x_ref, wd_ref, wp_ref, o_ref, xp_ref, acc_ref, *,
                    H, W, KH, KW, HO, WO, C, COUT, stride, padding, dilation,
                    mxu_dtype):
    """One batch element per grid step.

    x_ref  : (1, C, H, W)         unpadded NCHW input tile
    wd_ref : (KH*KW, C, 1, WO)    depthwise weights (per tap, per channel), f32
    wp_ref : (COUT, C)            pointwise (1x1) weights
    o_ref  : (1, COUT, HO*WO)     lane-dense output block
    xp_ref : VMEM (C, Hp, Wp) f32 zero-padded input staging buffer
    acc_ref: VMEM (C, HO*WO) f32  flat depthwise accumulator (matmul RHS)
    """
    # ---- Stage input into the zero-padded VMEM buffer (padding handled
    #      on-chip instead of an extra HBM rewrite in the wrapper). ----
    if padding > 0:
        xp_ref[...] = jnp.zeros(xp_ref.shape, xp_ref.dtype)
        xp_ref[:, pl.ds(padding, H), pl.ds(padding, W)] = (
            x_ref[0].astype(jnp.float32))
    else:
        xp_ref[...] = x_ref[0].astype(jnp.float32)

    # ---- Depthwise conv: KH*KW shifted windows, per-channel scale (VPU). ----
    def tap(dh, dw):
        h0 = dh * dilation
        w0 = dw * dilation
        hs = pl.ds(h0, HO) if stride == 1 else pl.ds(h0, HO, stride)
        ws = pl.ds(w0, WO) if stride == 1 else pl.ds(w0, WO, stride)
        return xp_ref[:, hs, ws]                        # (C, HO, WO), f32

    acc = None
    for dh in range(KH):
        for dw in range(KW):
            t = dh * KW + dw
            term = tap(dh, dw) * wd_ref[t]              # (C,HO,WO) * (C,1,WO)
            acc = term if acc is None else acc + term

    # ---- Relayout (C, HO, WO) -> (C, HO*WO): spatial onto the lane axis.
    #      Done with per-row stores (layout-safe; avoids a generic reshape). ----
    for i in range(HO):
        acc_ref[:, pl.ds(i * WO, WO)] = acc[:, i, :]

    # ---- Pointwise 1x1 conv on the MXU: (COUT, C) x (C, HO*WO), lane-dense N,
    #      f32 accumulation. ----
    y = jnp.dot(wp_ref[...].astype(mxu_dtype),
                acc_ref[...].astype(mxu_dtype),
                preferred_element_type=jnp.float32)      # (COUT, HO*WO)
    o_ref[0] = y.astype(o_ref.dtype)


def separable_conv2d(x_nchw, w_dw, w_pw, *, stride=1, padding=0, dilation=1,
                     mxu_dtype=jnp.float32):
    """Depthwise-separable conv2d (PyTorch SeparableConv2d forward, bias=False).

    x_nchw: (N, C, H, W)
    w_dw  : (C, 1, KH, KW)   depthwise weights (grouped-conv layout)
    w_pw  : (COUT, C, 1, 1)  pointwise weights
    returns (N, COUT, HO, WO)

    mxu_dtype: dtype fed to the pointwise matmul; set jnp.bfloat16 on v6e/v7x
    for large shapes (accumulation stays f32 via preferred_element_type).
    """
    N, C, H, W = x_nchw.shape
    COUT = int(w_pw.shape[0])
    KH, KW = int(w_dw.shape[2]), int(w_dw.shape[3])
    HO = (H + 2 * padding - dilation * (KH - 1) - 1) // stride + 1
    WO = (W + 2 * padding - dilation * (KW - 1) - 1) // stride + 1
    Hp, Wp = H + 2 * padding, W + 2 * padding

    # Depthwise weights -> (KH*KW, C, 1, WO): per-tap per-channel scale,
    # pre-broadcast along W so the in-kernel multiply is a plain sublane
    # broadcast (tiny array, built once).
    wd = jnp.transpose(w_dw[:, 0, :, :], (1, 2, 0)).reshape(KH * KW, C)
    wd = jnp.broadcast_to(wd[:, :, None, None], (KH * KW, C, 1, WO))
    wd = wd.astype(jnp.float32)
    # Pointwise weights -> (COUT, C) so the matmul is (COUT, C) x (C, HO*WO).
    wp = w_pw[:, :, 0, 0]

    kernel = functools.partial(
        _sepconv_kernel, H=H, W=W, KH=KH, KW=KW, HO=HO, WO=WO, C=C, COUT=COUT,
        stride=stride, padding=padding, dilation=dilation, mxu_dtype=mxu_dtype)

    itemsize = jnp.dtype(x_nchw.dtype).itemsize
    cost = pl.CostEstimate(
        flops=2 * N * HO * WO * C * (KH * KW + COUT),
        transcendentals=0,
        bytes_accessed=(N * C * H * W * itemsize
                        + wd.size * 4
                        + wp.size * jnp.dtype(wp.dtype).itemsize
                        + N * COUT * HO * WO * itemsize))

    # One batch element per grid step, whole image per block (fits VMEM at
    # these sizes); the grid axis is "parallel" so v7x's two TensorCores split
    # the batch.
    # TODO(synk): for large H*W*C, tile HO with a halo'd pl.Element input
    # BlockSpec (tile sized per-generation VMEM, ~24 MiB budget on v7x).
    out_flat = pl.pallas_call(
        kernel,
        out_shape=jax.ShapeDtypeStruct((N, COUT, HO * WO), x_nchw.dtype),
        grid_spec=pltpu.PrefetchScalarGridSpec(
            num_scalar_prefetch=0,
            grid=(N,),
            in_specs=[
                pl.BlockSpec((1, C, H, W), lambda n: (n, 0, 0, 0)),
                pl.BlockSpec((KH * KW, C, 1, WO), lambda n: (0, 0, 0, 0)),
                pl.BlockSpec((COUT, C), lambda n: (0, 0)),
            ],
            out_specs=pl.BlockSpec((1, COUT, HO * WO), lambda n: (n, 0, 0)),
            scratch_shapes=[
                pltpu.VMEM((C, Hp, Wp), jnp.float32),
                pltpu.VMEM((C, HO * WO), jnp.float32),
            ],
        ),
        compiler_params=pltpu.CompilerParams(
            dimension_semantics=("parallel",),
            vmem_limit_bytes=64 * 1024 * 1024),
        cost_estimate=cost,
    )(x_nchw, wd, wp)

    # Metadata-only (contiguous) reshape back to NCHW spatial dims.
    return out_flat.reshape(N, COUT, HO, WO)


def _reference(x_nchw, w_dw, w_pw, *, stride=1, padding=0, dilation=1):
    """Pure-JAX reference (lax conv) for correctness check."""
    C = x_nchw.shape[1]
    dw_out = lax.conv_general_dilated(
        x_nchw, w_dw,
        window_strides=(stride, stride),
        padding=((padding, padding), (padding, padding)),
        rhs_dilation=(dilation, dilation),
        dimension_numbers=("NCHW", "OIHW", "NCHW"),
        feature_group_count=C)
    return lax.conv_general_dilated(
        dw_out, w_pw,
        window_strides=(1, 1),
        padding=((0, 0), (0, 0)),
        dimension_numbers=("NCHW", "OIHW", "NCHW"))


if __name__ == "__main__":
    # SeparableConv2d(in_channels=4, out_channels=8, kernel_size=3, stride=1,
    #                 padding=1, dilation=1, bias=False)
    N, CIN, H, W = 2, 4, 16, 16
    COUT, K, STRIDE, PAD, DIL = 8, 3, 1, 1, 1

    key = jax.random.PRNGKey(0)
    kx, kdw, kpw = jax.random.split(key, 3)

    x = jax.random.normal(kx, (N, CIN, H, W), dtype=jnp.float32)
    # PyTorch weight shapes:
    #   conv1.weight     : (CIN, 1, K, K)   (groups=CIN)
    #   pointwise.weight : (COUT, CIN, 1, 1)
    w_dw = jax.random.normal(kdw, (CIN, 1, K, K), dtype=jnp.float32) * 0.1
    w_pw = jax.random.normal(kpw, (COUT, CIN, 1, 1), dtype=jnp.float32) * 0.1

    out = separable_conv2d(x, w_dw, w_pw, stride=STRIDE, padding=PAD, dilation=DIL)
    out = jax.block_until_ready(out)

    ref = _reference(x, w_dw, w_pw, stride=STRIDE, padding=PAD, dilation=DIL)
    assert out.shape == (N, COUT, H, W), out.shape
    np.testing.assert_allclose(np.asarray(out), np.asarray(ref), rtol=1e-5, atol=1e-5)

    print("KERNEL_OK")
</pallas_src>

<mosaic_0001>
module attributes {stable_mosaic.version = 11 : i64} {
  func.func @_sepconv_kernel(%arg0: i32, %arg1: memref<1x4x16x16xf32, #tpu.memory_space<vmem>>, %arg2: memref<9x4x1x16xf32, #tpu.memory_space<vmem>>, %arg3: memref<8x4xf32, #tpu.memory_space<vmem>>, %arg4: memref<1x8x256xf32, #tpu.memory_space<vmem>>, %arg5: memref<4x18x18xf32, #tpu.memory_space<vmem>>, %arg6: memref<4x256xf32, #tpu.memory_space<vmem>>) attributes {dimension_semantics = [#tpu.dimension_semantics<parallel>], iteration_bounds = array<i64: 2>, scalar_prefetch = 0 : i64, scratch_operands = 2 : i64, tpu.core_type = #tpu.core_type<tc>, window_params = [{transform_indices = @transform_0, window_bounds = array<i64: 1, 4, 16, 16>}, {pipeline_mode = #tpu.pipeline_mode<synchronous>, transform_indices = @transform_1, window_bounds = array<i64: 9, 4, 1, 16>}, {pipeline_mode = #tpu.pipeline_mode<synchronous>, transform_indices = @transform_2, window_bounds = array<i64: 8, 4>}, {transform_indices = @transform_3, window_bounds = array<i64: 1, 8, 256>}]} {
    %cst = arith.constant 0.000000e+00 : f32
    %0 = vector.broadcast %cst : f32 to vector<4x18x18xf32>
    %c0 = arith.constant 0 : index
    %c0_0 = arith.constant 0 : index
    %c0_1 = arith.constant 0 : index
    %1 = vector.load %arg5[%c0, %c0_0, %c0_1] : memref<4x18x18xf32, #tpu.memory_space<vmem>>, vector<4x18x18xf32>
    tpu.vector_store %arg5[%c0, %c0_0, %c0_1], %0 {strides = array<i32>} : memref<4x18x18xf32, #tpu.memory_space<vmem>>, vector<4x18x18xf32>,
    %c0_2 = arith.constant 0 : index
    %c0_3 = arith.constant 0 : index
    %c0_4 = arith.constant 0 : index
    %c0_5 = arith.constant 0 : index
    %2 = vector.load %arg1[%c0_2, %c0_3, %c0_4, %c0_5] : memref<1x4x16x16xf32, #tpu.memory_space<vmem>>, vector<1x4x16x16xf32>
    %3 = vector.shape_cast %2 : vector<1x4x16x16xf32> to vector<4x16x16xf32>
    %c0_6 = arith.constant 0 : index
    %c1 = arith.constant 1 : index
    %c1_7 = arith.constant 1 : index
    %4 = vector.load %arg5[%c0_6, %c1, %c1_7] : memref<4x18x18xf32, #tpu.memory_space<vmem>>, vector<4x16x16xf32>
    tpu.vector_store %arg5[%c0_6, %c1, %c1_7], %3 {strides = array<i32>} : memref<4x18x18xf32, #tpu.memory_space<vmem>>, vector<4x16x16xf32>,
    %c0_8 = arith.constant 0 : index
    %c0_9 = arith.constant 0 : index
    %c0_10 = arith.constant 0 : index
    %5 = vector.load %arg5[%c0_8, %c0_9, %c0_10] : memref<4x18x18xf32, #tpu.memory_space<vmem>>, vector<4x16x16xf32>
    %c0_11 = arith.constant 0 : index
    %c0_12 = arith.constant 0 : index
    %c0_13 = arith.constant 0 : index
    %c0_14 = arith.constant 0 : index
    %6 = vector.load %arg2[%c0_11, %c0_12, %c0_13, %c0_14] : memref<9x4x1x16xf32, #tpu.memory_space<vmem>>, vector<1x4x1x16xf32>
    %7 = vector.shape_cast %6 : vector<1x4x1x16xf32> to vector<4x1x16xf32>
    %8 = vector.broadcast %7 : vector<4x1x16xf32> to vector<4x16x16xf32>
    %9 = arith.mulf %5, %8 : vector<4x16x16xf32>
    %c0_15 = arith.constant 0 : index
    %c0_16 = arith.constant 0 : index
    %c1_17 = arith.constant 1 : index
    %10 = vector.load %arg5[%c0_15, %c0_16, %c1_17] : memref<4x18x18xf32, #tpu.memory_space<vmem>>, vector<4x16x16xf32>
    %c1_18 = arith.constant 1 : index
    %c0_19 = arith.constant 0 : index
    %c0_20 = arith.constant 0 : index
    %c0_21 = arith.constant 0 : index
    %11 = vector.load %arg2[%c1_18, %c0_19, %c0_20, %c0_21] : memref<9x4x1x16xf32, #tpu.memory_space<vmem>>, vector<1x4x1x16xf32>
    %12 = vector.shape_cast %11 : vector<1x4x1x16xf32> to vector<4x1x16xf32>
    %13 = vector.broadcast %12 : vector<4x1x16xf32> to vector<4x16x16xf32>
    %14 = arith.mulf %10, %13 : vector<4x16x16xf32>
    %15 = arith.addf %9, %14 : vector<4x16x16xf32>
    %c0_22 = arith.constant 0 : index
    %c0_23 = arith.constant 0 : index
    %c2 = arith.constant 2 : index
    %16 = vector.load %arg5[%c0_22, %c0_23, %c2] : memref<4x18x18xf32, #tpu.memory_space<vmem>>, vector<4x16x16xf32>
    %c2_24 = arith.constant 2 : index
    %c0_25 = arith.constant 0 : index
    %c0_26 = arith.constant 0 : index
    %c0_27 = arith.constant 0 : index
    %17 = vector.load %arg2[%c2_24, %c0_25, %c0_26, %c0_27] : memref<9x4x1x16xf32, #tpu.memory_space<vmem>>, vector<1x4x1x16xf32>
    %18 = vector.shape_cast %17 : vector<1x4x1x16xf32> to vector<4x1x16xf32>
    %19 = vector.broadcast %18 : vector<4x1x16xf32> to vector<4x16x16xf32>
    %20 = arith.mulf %16, %19 : vector<4x16x16xf32>
    %21 = arith.addf %15, %20 : vector<4x16x16xf32>
    %c0_28 = arith.constant 0 : index
    %c1_29 = arith.constant 1 : index
    %c0_30 = arith.constant 0 : index
    %22 = vector.load %arg5[%c0_28, %c1_29, %c0_30] : memref<4x18x18xf32, #tpu.memory_space<vmem>>, vector<4x16x16xf32>
    %c3 = arith.constant 3 : index
    %c0_31 = arith.constant 0 : index
    %c0_32 = arith.constant 0 : index
    %c0_33 = arith.constant 0 : index
    %23 = vector.load %arg2[%c3, %c0_31, %c0_32, %c0_33] : memref<9x4x1x16xf32, #tpu.memory_space<vmem>>, vector<1x4x1x16xf32>
    %24 = vector.shape_cast %23 : vector<1x4x1x16xf32> to vector<4x1x16xf32>
    %25 = vector.broadcast %24 : vector<4x1x16xf32> to vector<4x16x16xf32>
    %26 = arith.mulf %22, %25 : vector<4x16x16xf32>
    %27 = arith.addf %21, %26 : vector<4x16x16xf32>
    %c0_34 = arith.constant 0 : index
    %c1_35 = arith.constant 1 : index
    %c1_36 = arith.constant 1 : index
    %28 = vector.load %arg5[%c0_34, %c1_35, %c1_36] : memref<4x18x18xf32, #tpu.memory_space<vmem>>, vector<4x16x16xf32>
    %c4 = arith.constant 4 : index
    %c0_37 = arith.constant 0 : index
    %c0_38 = arith.constant 0 : index
    %c0_39 = arith.constant 0 : index
    %29 = vector.load %arg2[%c4, %c0_37, %c0_38, %c0_39] : memref<9x4x1x16xf32, #tpu.memory_space<vmem>>, vector<1x4x1x16xf32>
    %30 = vector.shape_cast %29 : vector<1x4x1x16xf32> to vector<4x1x16xf32>
    %31 = vector.broadcast %30 : vector<4x1x16xf32> to vector<4x16x16xf32>
    %32 = arith.mulf %28, %31 : vector<4x16x16xf32>
    %33 = arith.addf %27, %32 : vector<4x16x16xf32>
    %c0_40 = arith.constant 0 : index
    %c1_41 = arith.constant 1 : index
    %c2_42 = arith.constant 2 : index
    %34 = vector.load %arg5[%c0_40, %c1_41, %c2_42] : memref<4x18x18xf32, #tpu.memory_space<vmem>>, vector<4x16x16xf32>
    %c5 = arith.constant 5 : index
    %c0_43 = arith.constant 0 : index
    %c0_44 = arith.constant 0 : index
    %c0_45 = arith.constant 0 : index
    %35 = vector.load %arg2[%c5, %c0_43, %c0_44, %c0_45] : memref<9x4x1x16xf32, #tpu.memory_space<vmem>>, vector<1x4x1x16xf32>
    %36 = vector.shape_cast %35 : vector<1x4x1x16xf32> to vector<4x1x16xf32>
    %37 = vector.broadcast %36 : vector<4x1x16xf32> to vector<4x16x16xf32>
    %38 = arith.mulf %34, %37 : vector<4x16x16xf32>
    %39 = arith.addf %33, %38 : vector<4x16x16xf32>
    %c0_46 = arith.constant 0 : index
    %c2_47 = arith.constant 2 : index
    %c0_48 = arith.constant 0 : index
    %40 = vector.load %arg5[%c0_46, %c2_47, %c0_48] : memref<4x18x18xf32, #tpu.memory_space<vmem>>, vector<4x16x16xf32>
    %c6 = arith.constant 6 : index
    %c0_49 = arith.constant 0 : index
    %c0_50 = arith.constant 0 : index
    %c0_51 = arith.constant 0 : index
    %41 = vector.load %arg2[%c6, %c0_49, %c0_50, %c0_51] : memref<9x4x1x16xf32, #tpu.memory_space<vmem>>, vector<1x4x1x16xf32>
    %42 = vector.shape_cast %41 : vector<1x4x1x16xf32> to vector<4x1x16xf32>
    %43 = vector.broadcast %42 : vector<4x1x16xf32> to vector<4x16x16xf32>
    %44 = arith.mulf %40, %43 : vector<4x16x16xf32>
    %45 = arith.addf %39, %44 : vector<4x16x16xf32>
    %c0_52 = arith.constant 0 : index
    %c2_53 = arith.constant 2 : index
    %c1_54 = arith.constant 1 : index
    %46 = vector.load %arg5[%c0_52, %c2_53, %c1_54] : memref<4x18x18xf32, #tpu.memory_space<vmem>>, vector<4x16x16xf32>
    %c7 = arith.constant 7 : index
    %c0_55 = arith.constant 0 : index
    %c0_56 = arith.constant 0 : index
    %c0_57 = arith.constant 0 : index
    %47 = vector.load %arg2[%c7, %c0_55, %c0_56, %c0_57] : memref<9x4x1x16xf32, #tpu.memory_space<vmem>>, vector<1x4x1x16xf32>
    %48 = vector.shape_cast %47 : vector<1x4x1x16xf32> to vector<4x1x16xf32>
    %49 = vector.broadcast %48 : vector<4x1x16xf32> to vector<4x16x16xf32>
    %50 = arith.mulf %46, %49 : vector<4x16x16xf32>
    %51 = arith.addf %45, %50 : vector<4x16x16xf32>
    %c0_58 = arith.constant 0 : index
    %c2_59 = arith.constant 2 : index
    %c2_60 = arith.constant 2 : index
    %52 = vector.load %arg5[%c0_58, %c2_59, %c2_60] : memref<4x18x18xf32, #tpu.memory_space<vmem>>, vector<4x16x16xf32>
    %c8 = arith.constant 8 : index
    %c0_61 = arith.constant 0 : index
    %c0_62 = arith.constant 0 : index
    %c0_63 = arith.constant 0 : index
    %53 = vector.load %arg2[%c8, %c0_61, %c0_62, %c0_63] : memref<9x4x1x16xf32, #tpu.memory_space<vmem>>, vector<1x4x1x16xf32>
    %54 = vector.shape_cast %53 : vector<1x4x1x16xf32> to vector<4x1x16xf32>
    %55 = vector.broadcast %54 : vector<4x1x16xf32> to vector<4x16x16xf32>
    %56 = arith.mulf %52, %55 : vector<4x16x16xf32>
    %57 = arith.addf %51, %56 : vector<4x16x16xf32>
    %58 = vector.extract_strided_slice %57 {offsets = [0, 0, 0], sizes = [4, 1, 16], strides = [1, 1, 1]} : vector<4x16x16xf32> to vector<4x1x16xf32>
    %59 = vector.shape_cast %58 : vector<4x1x16xf32> to vector<4x16xf32>
    %c0_64 = arith.constant 0 : index
    %c0_65 = arith.constant 0 : index
    %60 = vector.load %arg6[%c0_64, %c0_65] : memref<4x256xf32, #tpu.memory_space<vmem>>, vector<4x16xf32>
    tpu.vector_store %arg6[%c0_64, %c0_65], %59 {strides = array<i32>} : memref<4x256xf32, #tpu.memory_space<vmem>>, vector<4x16xf32>,
    %61 = vector.extract_strided_slice %57 {offsets = [0, 1, 0], sizes = [4, 1, 16], strides = [1, 1, 1]} : vector<4x16x16xf32> to vector<4x1x16xf32>
    %62 = vector.shape_cast %61 : vector<4x1x16xf32> to vector<4x16xf32>
    %c0_66 = arith.constant 0 : index
    %c16 = arith.constant 16 : index
    %63 = vector.load %arg6[%c0_66, %c16] : memref<4x256xf32, #tpu.memory_space<vmem>>, vector<4x16xf32>
    tpu.vector_store %arg6[%c0_66, %c16], %62 {strides = array<i32>} : memref<4x256xf32, #tpu.memory_space<vmem>>, vector<4x16xf32>,
    %64 = vector.extract_strided_slice %57 {offsets = [0, 2, 0], sizes = [4, 1, 16], strides = [1, 1, 1]} : vector<4x16x16xf32> to vector<4x1x16xf32>
    %65 = vector.shape_cast %64 : vector<4x1x16xf32> to vector<4x16xf32>
    %c0_67 = arith.constant 0 : index
    %c32 = arith.constant 32 : index
    %66 = vector.load %arg6[%c0_67, %c32] : memref<4x256xf32, #tpu.memory_space<vmem>>, vector<4x16xf32>
    tpu.vector_store %arg6[%c0_67, %c32], %65 {strides = array<i32>} : memref<4x256xf32, #tpu.memory_space<vmem>>, vector<4x16xf32>,
    %67 = vector.extract_strided_slice %57 {offsets = [0, 3, 0], sizes = [4, 1, 16], strides = [1, 1, 1]} : vector<4x16x16xf32> to vector<4x1x16xf32>
    %68 = vector.shape_cast %67 : vector<4x1x16xf32> to vector<4x16xf32>
    %c0_68 = arith.constant 0 : index
    %c48 = arith.constant 48 : index
    %69 = vector.load %arg6[%c0_68, %c48] : memref<4x256xf32, #tpu.memory_space<vmem>>, vector<4x16xf32>
    tpu.vector_store %arg6[%c0_68, %c48], %68 {strides = array<i32>} : memref<4x256xf32, #tpu.memory_space<vmem>>, vector<4x16xf32>,
    %70 = vector.extract_strided_slice %57 {offsets = [0, 4, 0], sizes = [4, 1, 16], strides = [1, 1, 1]} : vector<4x16x16xf32> to vector<4x1x16xf32>
    %71 = vector.shape_cast %70 : vector<4x1x16xf32> to vector<4x16xf32>
    %c0_69 = arith.constant 0 : index
    %c64 = arith.constant 64 : index
    %72 = vector.load %arg6[%c0_69, %c64] : memref<4x256xf32, #tpu.memory_space<vmem>>, vector<4x16xf32>
    tpu.vector_store %arg6[%c0_69, %c64], %71 {strides = array<i32>} : memref<4x256xf32, #tpu.memory_space<vmem>>, vector<4x16xf32>,
    %73 = vector.extract_strided_slice %57 {offsets = [0, 5, 0], sizes = [4, 1, 16], strides = [1, 1, 1]} : vector<4x16x16xf32> to vector<4x1x16xf32>
    %74 = vector.shape_cast %73 : vector<4x1x16xf32> to vector<4x16xf32>
    %c0_70 = arith.constant 0 : index
    %c80 = arith.constant 80 : index
    %75 = vector.load %arg6[%c0_70, %c80] : memref<4x256xf32, #tpu.memory_space<vmem>>, vector<4x16xf32>
    tpu.vector_store %arg6[%c0_70, %c80], %74 {strides = array<i32>} : memref<4x256xf32, #tpu.memory_space<vmem>>, vector<4x16xf32>,
    %76 = vector.extract_strided_slice %57 {offsets = [0, 6, 0], sizes = [4, 1, 16], strides = [1, 1, 1]} : vector<4x16x16xf32> to vector<4x1x16xf32>
    %77 = vector.shape_cast %76 : vector<4x1x16xf32> to vector<4x16xf32>
    %c0_71 = arith.constant 0 : index
    %c96 = arith.constant 96 : index
    %78 = vector.load %arg6[%c0_71, %c96] : memref<4x256xf32, #tpu.memory_space<vmem>>, vector<4x16xf32>
    tpu.vector_store %arg6[%c0_71, %c96], %77 {strides = array<i32>} : memref<4x256xf32, #tpu.memory_space<vmem>>, vector<4x16xf32>,
    %79 = vector.extract_strided_slice %57 {offsets = [0, 7, 0], sizes = [4, 1, 16], strides = [1, 1, 1]} : vector<4x16x16xf32> to vector<4x1x16xf32>
    %80 = vector.shape_cast %79 : vector<4x1x16xf32> to vector<4x16xf32>
    %c0_72 = arith.constant 0 : index
    %c112 = arith.constant 112 : index
    %81 = vector.load %arg6[%c0_72, %c112] : memref<4x256xf32, #tpu.memory_space<vmem>>, vector<4x16xf32>
    tpu.vector_store %arg6[%c0_72, %c112], %80 {strides = array<i32>} : memref<4x256xf32, #tpu.memory_space<vmem>>, vector<4x16xf32>,
    %82 = vector.extract_strided_slice %57 {offsets = [0, 8, 0], sizes = [4, 1, 16], strides = [1, 1, 1]} : vector<4x16x16xf32> to vector<4x1x16xf32>
    %83 = vector.shape_cast %82 : vector<4x1x16xf32> to vector<4x16xf32>
    %c0_73 = arith.constant 0 : index
    %c128 = arith.constant 128 : index
    %84 = vector.load %arg6[%c0_73, %c128] : memref<4x256xf32, #tpu.memory_space<vmem>>, vector<4x16xf32>
    tpu.vector_store %arg6[%c0_73, %c128], %83 {strides = array<i32>} : memref<4x256xf32, #tpu.memory_space<vmem>>, vector<4x16xf32>,
    %85 = vector.extract_strided_slice %57 {offsets = [0, 9, 0], sizes = [4, 1, 16], strides = [1, 1, 1]} : vector<4x16x16xf32> to vector<4x1x16xf32>
    %86 = vector.shape_cast %85 : vector<4x1x16xf32> to vector<4x16xf32>
    %c0_74 = arith.constant 0 : index
    %c144 = arith.constant 144 : index
    %87 = vector.load %arg6[%c0_74, %c144] : memref<4x256xf32, #tpu.memory_space<vmem>>, vector<4x16xf32>
    tpu.vector_store %arg6[%c0_74, %c144], %86 {strides = array<i32>} : memref<4x256xf32, #tpu.memory_space<vmem>>, vector<4x16xf32>,
    %88 = vector.extract_strided_slice %57 {offsets = [0, 10, 0], sizes = [4, 1, 16], strides = [1, 1, 1]} : vector<4x16x16xf32> to vector<4x1x16xf32>
    %89 = vector.shape_cast %88 : vector<4x1x16xf32> to vector<4x16xf32>
    %c0_75 = arith.constant 0 : index
    %c160 = arith.constant 160 : index
    %90 = vector.load %arg6[%c0_75, %c160] : memref<4x256xf32, #tpu.memory_space<vmem>>, vector<4x16xf32>
    tpu.vector_store %arg6[%c0_75, %c160], %89 {strides = array<i32>} : memref<4x256xf32, #tpu.memory_space<vmem>>, vector<4x16xf32>,
    %91 = vector.extract_strided_slice %57 {offsets = [0, 11, 0], sizes = [4, 1, 16], strides = [1, 1, 1]} : vector<4x16x16xf32> to vector<4x1x16xf32>
    %92 = vector.shape_cast %91 : vector<4x1x16xf32> to vector<4x16xf32>
    %c0_76 = arith.constant 0 : index
    %c176 = arith.constant 176 : index
    %93 = vector.load %arg6[%c0_76, %c176] : memref<4x256xf32, #tpu.memory_space<vmem>>, vector<4x16xf32>
    tpu.vector_store %arg6[%c0_76, %c176], %92 {strides = array<i32>} : memref<4x256xf32, #tpu.memory_space<vmem>>, vector<4x16xf32>,
    %94 = vector.extract_strided_slice %57 {offsets = [0, 12, 0], sizes = [4, 1, 16], strides = [1, 1, 1]} : vector<4x16x16xf32> to vector<4x1x16xf32>
    %95 = vector.shape_cast %94 : vector<4x1x16xf32> to vector<4x16xf32>
    %c0_77 = arith.constant 0 : index
    %c192 = arith.constant 192 : index
    %96 = vector.load %arg6[%c0_77, %c192] : memref<4x256xf32, #tpu.memory_space<vmem>>, vector<4x16xf32>
    tpu.vector_store %arg6[%c0_77, %c192], %95 {strides = array<i32>} : memref<4x256xf32, #tpu.memory_space<vmem>>, vector<4x16xf32>,
    %97 = vector.extract_strided_slice %57 {offsets = [0, 13, 0], sizes = [4, 1, 16], strides = [1, 1, 1]} : vector<4x16x16xf32> to vector<4x1x16xf32>
    %98 = vector.shape_cast %97 : vector<4x1x16xf32> to vector<4x16xf32>
    %c0_78 = arith.constant 0 : index
    %c208 = arith.constant 208 : index
    %99 = vector.load %arg6[%c0_78, %c208] : memref<4x256xf32, #tpu.memory_space<vmem>>, vector<4x16xf32>
    tpu.vector_store %arg6[%c0_78, %c208], %98 {strides = array<i32>} : memref<4x256xf32, #tpu.memory_space<vmem>>, vector<4x16xf32>,
    %100 = vector.extract_strided_slice %57 {offsets = [0, 14, 0], sizes = [4, 1, 16], strides = [1, 1, 1]} : vector<4x16x16xf32> to vector<4x1x16xf32>
    %101 = vector.shape_cast %100 : vector<4x1x16xf32> to vector<4x16xf32>
    %c0_79 = arith.constant 0 : index
    %c224 = arith.constant 224 : index
    %102 = vector.load %arg6[%c0_79, %c224] : memref<4x256xf32, #tpu.memory_space<vmem>>, vector<4x16xf32>
    tpu.vector_store %arg6[%c0_79, %c224], %101 {strides = array<i32>} : memref<4x256xf32, #tpu.memory_space<vmem>>, vector<4x16xf32>,
    %103 = vector.extract_strided_slice %57 {offsets = [0, 15, 0], sizes = [4, 1, 16], strides = [1, 1, 1]} : vector<4x16x16xf32> to vector<4x1x16xf32>
    %104 = vector.shape_cast %103 : vector<4x1x16xf32> to vector<4x16xf32>
    %c0_80 = arith.constant 0 : index
    %c240 = arith.constant 240 : index
    %105 = vector.load %arg6[%c0_80, %c240] : memref<4x256xf32, #tpu.memory_space<vmem>>, vector<4x16xf32>
    tpu.vector_store %arg6[%c0_80, %c240], %104 {strides = array<i32>} : memref<4x256xf32, #tpu.memory_space<vmem>>, vector<4x16xf32>,
    %c0_81 = arith.constant 0 : index
    %c0_82 = arith.constant 0 : index
    %106 = vector.load %arg3[%c0_81, %c0_82] : memref<8x4xf32, #tpu.memory_space<vmem>>, vector<8x4xf32>
    %c0_83 = arith.constant 0 : index
    %c0_84 = arith.constant 0 : index
    %107 = vector.load %arg6[%c0_83, %c0_84] : memref<4x256xf32, #tpu.memory_space<vmem>>, vector<4x256xf32>
    %cst_85 = arith.constant dense<0.000000e+00> : vector<8x256xf32>
    %108 = tpu.matmul %106, %107, %cst_85 {dimension_numbers = #tpu.dot_dimension_numbers<[1], [0], [0], [1], [0, 0, 1, 1], [], []>} : vector<8x4xf32>, vector<4x256xf32>, vector<8x256xf32> -> vector<8x256xf32>
    %c0_86 = arith.constant 0 : index
    %c0_87 = arith.constant 0 : index
    %c0_88 = arith.constant 0 : index
    %109 = vector.load %arg4[%c0_86, %c0_87, %c0_88] : memref<1x8x256xf32, #tpu.memory_space<vmem>>, vector<1x8x256xf32>
    %110 = vector.shape_cast %109 : vector<1x8x256xf32> to vector<8x256xf32>
    %111 = vector.shape_cast %108 : vector<8x256xf32> to vector<1x8x256xf32>
    tpu.vector_store %arg4[%c0_86, %c0_87, %c0_88], %111 {strides = array<i32>} : memref<1x8x256xf32, #tpu.memory_space<vmem>>, vector<1x8x256xf32>,
    return
  }
  func.func @transform_0(%arg0: i32) -> (i32, i32, i32, i32) {
    %c0_i32 = arith.constant 0 : i32
    %c0_i32_0 = arith.constant 0 : i32
    %c0_i32_1 = arith.constant 0 : i32
    %c0_i32_2 = arith.constant 0 : i32
    return %arg0, %c0_i32, %c0_i32_0, %c0_i32_1 : i32, i32, i32, i32
  }
  func.func @transform_1(%arg0: i32) -> (i32, i32, i32, i32) {
    %c0_i32 = arith.constant 0 : i32
    %c0_i32_0 = arith.constant 0 : i32
    %c0_i32_1 = arith.constant 0 : i32
    %c0_i32_2 = arith.constant 0 : i32
    %c0_i32_3 = arith.constant 0 : i32
    return %c0_i32, %c0_i32_0, %c0_i32_1, %c0_i32_2 : i32, i32, i32, i32
  }
  func.func @transform_2(%arg0: i32) -> (i32, i32) {
    %c0_i32 = arith.constant 0 : i32
    %c0_i32_0 = arith.constant 0 : i32
    %c0_i32_1 = arith.constant 0 : i32
    return %c0_i32, %c0_i32_0 : i32, i32
  }
  func.func @transform_3(%arg0: i32) -> (i32, i32, i32) {
    %c0_i32 = arith.constant 0 : i32
    %c0_i32_0 = arith.constant 0 : i32
    %c0_i32_1 = arith.constant 0 : i32
    return %arg0, %c0_i32, %c0_i32_0 : i32, i32, i32
  }
}

</mosaic_0001>

<bundles_post_ra>
// kernel: tpu_custom_call.1
= control target key start
LH: loop header
LB: loop body
LE: loop exit
PB: predicated region body
PF: predicated region fallthrough
CT: control target
= control target key end

     0   :  { %8 = vsyncpa [#allocation5], 0  ;;  %s2280_s0 = inlined_call_operand.hbm [shape: f32[2,4,16,16], index: 0, kind: input, shape index: {}]   ;;  %s2281_s1 = inlined_call_operand.hbm [shape: f32[9,4,1,16], index: 1, kind: input, shape index: {}]   ;;  %s2282_s2 = inlined_call_operand.vmem [shape: f32[8,4], index: 2, kind: input, shape index: {}]   ;;  %s2283_s3 = inlined_call_operand.hbm [shape: f32[2,8,256], index: 3, kind: output, shape index: {}]  }
   0x1   :  { %10 = vsyncpa [#allocation5 + $0x1], 0 }
   0x2   :  { %11 = vsyncpa [#allocation8], 0 }
   0x3   :  { %12 = vsyncpa [#allocation6], 0 }
   0x4   :  { %14 = vsyncpa [#allocation6 + $0x1], 0  ;;  %s1636_s12 = smov 0   ;;  %s1638_s13 = smov 0  }
   0x5   :  { %s1640_s14 = smov 0   ;;  %s1642_s15 = smov 0  }
   0x6 LB: > { %s1657_s16 = sadd.s32 4294967295, %s1595_s15   ;;  %s1342_s17 = sadd.s32 4294967294, %s1595_s15   ;;  %s1595_s15 = sphi %s1642_s15, %s2305_s15   ;;  %s1591_s14 = sphi %s1640_s14, %s2304_s14   ;;  %s1587_s13 = sphi %s1638_s13, %s2303_s13   ;;  %s1583_s12 = sphi %s1636_s12, %s2302_s12  }
   0x7   : > { %p40_p0 = scmp.ne.s32.totalorder %s1587_s13, %s1583_s12  ;;  %p2284_p1 = scmp.eq.s32.totalorder %s1657_s16, 0 }
   0x8   : > { %p112_p3 = scmp.eq.s32.totalorder %s1342_s17, 1  ;;  %p1343_p5 = scmp.ge.s32.totalorder %s1595_s15, 1 }
   0x9   : > { %p1666_p4 = por %p2284_p1, %p40_p0  ;;  %p119_p7 = scmp.lt.s32.totalorder %s1595_s15, 3 }
   0xa   : > { %p1671_p6 = por %p112_p3, %p40_p0  ;;  %s1597_s21 = smov [#allocation7]  }
   0xb   : > { %s2288_s18 = scalar_select %p1666_p4, 1, 0 }
   0xc   : > { %s2289_s19 = scalar_select %p1671_p6, 1, 0 }
   0xd   : > { %p1676_p8 = pnand %p1343_p5, %p119_p7  ;;  %s131_s22 = sshll.u32 %s1597_s21, 4  ;;  %s132_s22 = int_to_ptr.vmem [resolvable:$true] %s131_s22 }
   0xe   : > { %s1690_s24 = sadd.s32 1, %s1595_s15   ;;  %s27_s25 = sadd.s32 1, %s1591_s14 }
   0xf   : > { %s2290_s20 = scalar_select %p1676_p8, 1, 0 }
  0x10   : > { %p1407_p9 = pneg %p1676_p8  ;;  %s24_s26 = ssub.s32 %s1595_s15, %s1690_s24 }
  0x11   : > { %s1484_s27 = scalar_lea.vmem %s132_s22, 576  ;;  %p1492_p5 = scmp.lt.s32.totalorder %s132_s22, %s132_s22 }
  0x12   : > { %p1685_p11 = pnand %p1407_p9, %p2284_p1  ;;  %p1485_p13 = scmp.ne.s32.totalorder %s132_s22, %s1484_s27 }
  0x13   : > { %p1493_p7 = scmp.lt.s32.totalorder %s1484_s27, %s1484_s27 }
  0x14   : > { %p1475_p12 = pneg %p1685_p11 }
  0x15   : > { %p1494_p10 = por %p1493_p7, %p1492_p5 }
  0x16   : > { %p1487_p0 = pnand %p1485_p13, %p1475_p12 }
  0x18   : > { %p1488_p3 = pneg %p1487_p0 }
  0x1a   : > { %p1495_p2 = pnand %p1494_p10, %p1488_p3 }
  0x1c   : > { %1498 = shalt.err (!%p1495_p2)
}
  0x1d   : > { %s1598_s28 = smov 16   ;;  %s1599_s29 = smov 1  }
  0x1e   : > { %1410 = dma.hbm_to_vmem [thread:$0]  (!%p1685_p11), %s2281_s1, 576, %s132_s22, [#allocation8], %s1598_s28, %s1598_s28, %s1599_s29  }
  0x1f   : > { %p25_p9 = scmp.eq.s32.totalorder %s24_s26, 0  ;;  %p34_p12 = scmp.ne.s32.totalorder %s1591_s14, %s1587_s13 }
  0x20   : > { %p35_p10 = scmp.eq.s32.totalorder %s1595_s15, 0  ;;  %p1420_p2 = scmp.lt.s32.totalorder %s1595_s15, 2 }
  0x21   : > { %s1707_s5 = scalar_select %p25_p9, %s1591_s14, %s27_s25  }
  0x22   : > { %p36_p13 = por %p35_p10, %p34_p12  ;;  %p2292_p0 = scmp.eq.s32.totalorder %s1657_s16, 1 }
  0x23   : > { %s148_s7 = sand.u32 1, %s1591_s14   ;;  %s1397_s8 = sshll.u32 %s1595_s15, 10 }
  0x24   : > { %p1711_p3 = por %p2292_p0, %p34_p12  ;;  %s1346_s9 = sshll.u32 %s148_s7, 6 }
  0x25   : > { %s1720_s17 = scalar_lea.hbm %s2280_s0, %s1397_s8  ;;  %s152_s21 = scalar_lea.vmem [#allocation4], %s1346_s9 }
  0x26   : > { %s2293_s6 = scalar_select %p1711_p3, 1, 0 }
  0x27   : > { %s159_s22 = sshll.u32 %s152_s21, 4  ;;  %p1722_p11 = pnand %p1420_p2, %p36_p13  ;;  %s1726_s22 = int_to_ptr.vmem [resolvable:$true] %s159_s22 }
  0x28   : > { %s1728_s25 = scalar_lea.sflag [#allocation5], %s148_s7  ;;  %s1499_s26 = scalar_lea.hbm %s1720_s17, 1024 }
  0x29   : > { %p1500_p5 = scmp.ne.s32.totalorder %s1720_s17, %s1499_s26  ;;  %p1501_p7 = pneg %p1722_p11 }
  0x2a   : > { %s1504_s29 = scalar_lea.hbm %s2280_s0, 2048  ;;  %p1505_p10 = scmp.lt.s32.totalorder %s1720_s17, %s2280_s0 }
  0x2b   : > { %p1502_p9 = pnand %p1501_p7, %p1500_p5  ;;  %p1506_p2 = scmp.lt.s32.totalorder %s1504_s29, %s1499_s26 }
  0x2d   : > { %p1503_p12 = pneg %p1502_p9  ;;  %p1507_p13 = por %p1506_p2, %p1505_p10 }
  0x2f   : > { %p1508_p0 = pnand %p1507_p13, %p1503_p12 }
  0x31   : > { %1511 = shalt.err (!%p1508_p0)
}
  0x32   : > { %s1512_s7 = scalar_lea.vmem %s1726_s22, 1024  ;;  %s1600_s8 = smov [#allocation4]  }
  0x33   : > { %p1513_p1 = scmp.ne.s32.totalorder %s1726_s22, %s1512_s7  ;;  %s1517_s9 = sshll.u32 %s1600_s8, 4  ;;  %s1518_s9 = int_to_ptr.vmem [resolvable:$false] %s1517_s9 }
  0x34   : > { %s1519_s10 = scalar_lea.vmem %s1518_s9, 2048  ;;  %p1520_p9 = scmp.lt.s32.totalorder %s1726_s22, %s1518_s9 }
  0x35   : > { %p1515_p6 = pnand %p1513_p1, %p1501_p7  ;;  %p1521_p3 = scmp.lt.s32.totalorder %s1519_s10, %s1512_s7 }
  0x37   : > { %p1516_p5 = pneg %p1515_p6  ;;  %p1522_p4 = por %p1521_p3, %p1520_p9 }
  0x39   : > { %p1523_p8 = pnand %p1522_p4, %p1516_p5 }
  0x3b   : > { %1526 = shalt.err (!%p1523_p8)
}
  0x3c   : > { %s1601_s11 = smov 128   ;;  %s1602_s21 = smov 8  }
  0x3d   : > { %1414 = dma.hbm_to_vmem [thread:$0]  (!%p1722_p11), %s1720_s17, 1024, %s1726_s22, %s1728_s25, %s1601_s11, %s1601_s11, %s1602_s21  }
  0x3e   : > { %p2295_p1 = scmp.ne.s32.totalorder %s2290_s20, 0 }
  0x3f   : > { %s1752_s26 = sand.u32 (!%p2295_p1), 1, %s1587_s13   ;;  %p2296_p4 = scmp.ne.s32.totalorder (!%p2295_p1), %s2288_s18, 0 }
  0x40   : > { %171 = sbr.rel (%p2295_p1) target bundleno = 781 (0x30d), region = 32  ;;  %s1350_s27 = sshll.u32 (!%p2295_p1), %s1752_s26, 6 }
  0x41   : > { %s174_s28 = scalar_lea.sflag (!%p2295_p1), [#allocation5], %s1752_s26  ;;  %s1756_s29 = scalar_lea.vmem (!%p2295_p1), [#allocation4], %s1350_s27 }
  0x45   : > { %1570 = dma.done.wait (%p2296_p4), %s174_s28, 1024  }
  0x46   : > { %1572 = vsyncadd (%p2296_p4), %s174_s28, 4294966272  ;;  %p2297_p6 = scmp.eq.s32.totalorder %s1657_s16, 0 }
  0x48   : > { %1574 = dma.done.wait (%p2297_p6), [#allocation8], 576   ;;  %p2298_p8 = pmov %p2297_p6 }
  0x49   : > { %vm204_vm0 = vcmask 146432   ;;  %v1603_v0 = vmov 0.0   ;;  %vm207_vm1 = vcmask 140288   ;;  %v220_v1 = vld [vmem:[%s1756_s29 + $0x10] sm:$0xff]  ;;  %v218_v2 = vld [vmem:[%s1756_s29] sm:$0xff]  ;;  %s1604_s18 = smov 1  }
  0x4a   : > { %1576 = vsyncadd (%p2298_p8), [#allocation8], 4294966720  ;;  %209 = vst.msk [vmem:[#allocation2 + $0x18] sm:$0xff] %vm204_vm0, %v1603_v0  ;;  %1238 = vmatprep.mubr.f32.mxu0 %v1603_v0  ;;  %238 = vrot.lane.b32.xlu1 %v220_v1, %s1604_s18  ;;  %v221_v3 = vld [vmem:[%s1756_s29 + $0x18] sm:$0xff]  ;;  %v219_v4 = vld [vmem:[%s1756_s29 + $0x8] sm:$0xff]  ;;  %s1605_s20 = smov 2  }
  0x4b   : > { %210 = vst.msk [vmem:[#allocation2 + $0x20] sm:$0xff] %vm204_vm0, %v1603_v0  ;;  %205 = vst.msk [vmem:[#allocation2] sm:$0xff] %vm204_vm0, %v1603_v0  ;;  %234 = vrot.lane.b32.xlu0 %v218_v2, %s1604_s18  ;;  %v223_v5 = vld [vmem:[%s1756_s29 + $0x28] sm:$0xff]  ;;  %v222_v6 = vld [vmem:[%s1756_s29 + $0x20] sm:$0xff]  ;;  %vm258_vm2 = vcmask 138248   ;;  %s1606_s17 = smov 127  }
  0x4c   : > { %206 = vst.msk [vmem:[#allocation2 + $0x8] sm:$0xff] %vm204_vm0, %v1603_v0  ;;  %212 = vst.msk [vmem:[#allocation2 + $0x30] sm:$0xff] %vm204_vm0, %v1603_v0  ;;  %v225_v7 = vld [vmem:[%s1756_s29 + $0x38] sm:$0xff]  ;;  %v224_v8 = vld [vmem:[%s1756_s29 + $0x30] sm:$0xff]  ;;  %s1607_s22 = smov 126   ;;  %vm932_vm3 = vcmask 1041409  }
  0x4d   : > { %213 = vst.msk [vmem:[#allocation2 + $0x38] sm:$0xff] %vm204_vm0, %v1603_v0  ;;  %215 = vst.msk [vmem:[#allocation2 + $0x48] sm:$0xff] %vm204_vm0, %v1603_v0  ;;  %v1358_v9 = vld [vmem:[#allocation7 + $0x5] ss:$0 sm:$0xff]  ;;  %v1357_v10 = vld [vmem:[#allocation7 + $0x4] ss:$0 sm:$0xff] }
  0x4e   : > { %216 = vst.msk [vmem:[#allocation2 + $0x50] sm:$0xff] %vm204_vm0, %v1603_v0  ;;  %240 = vrot.lane.b32.xlu1 %v221_v3, %s1604_s18  ;;  %v1361_v11 = vld [vmem:[#allocation7 + $0x8] ss:$0 sm:$0xff]  ;;  %v1359_v12 = vld [vmem:[#allocation7 + $0x6] ss:$0 sm:$0xff]  ;;  %vm934_vm4 = vcmask 1045509  }
  0x4f   : > { %211 = vst.msk [vmem:[#allocation2 + $0x28] sm:$0x3] %vm207_vm1, %v1603_v0  ;;  %208 = vst.msk [vmem:[#allocation2 + $0x10] sm:$0x3] %vm207_vm1, %v1603_v0  ;;  %236 = vrot.lane.b32.xlu0 %v219_v4, %s1604_s18  ;;  %v1360_v13 = vld [vmem:[#allocation7 + $0x7] ss:$0 sm:$0xff] }
  0x50   : > { %214 = vst.msk [vmem:[#allocation2 + $0x40] sm:$0x3] %vm207_vm1, %v1603_v0  ;;  %217 = vst.msk [vmem:[#allocation2 + $0x58] sm:$0x3] %vm207_vm1, %v1603_v0  ;;  %v1362_v14 = vld [vmem:[#allocation7 + $0x9] ss:$0 sm:$0xff] }
  0x51   : > { %v1364_v15 = vld [vmem:[#allocation7 + $0xb] ss:$0 sm:$0xff]  ;;  %v1363_v16 = vld [vmem:[#allocation7 + $0xa] ss:$0 sm:$0xff]  ;;  %v1370_v17 = vld [vmem:[#allocation7 + $0x11] ss:$0 sm:$0xff] }
  0x52   : > { %244 = vrot.lane.b32.xlu1 %v223_v5, %s1604_s18  ;;  %v1369_v18 = vld [vmem:[#allocation7 + $0x10] ss:$0 sm:$0xff]  ;;  %v1373_v19 = vld [vmem:[#allocation7 + $0x14] ss:$0 sm:$0xff]  ;;  %v1371_v20 = vld [vmem:[#allocation7 + $0x12] ss:$0 sm:$0xff] }
  0x53   : > { %242 = vrot.lane.b32.xlu0 %v222_v6, %s1604_s18  ;;  %v1372_v21 = vld [vmem:[#allocation7 + $0x13] ss:$0 sm:$0xff]  ;;  %v1374_v22 = vld [vmem:[#allocation7 + $0x15] ss:$0 sm:$0xff]  ;;  %v1376_v23 = vld [vmem:[#allocation7 + $0x17] ss:$0 sm:$0xff] }
  0x54   : > { %v1375_v24 = vld [vmem:[#allocation7 + $0x16] ss:$0 sm:$0xff]  ;;  %v1382_v25 = vld [vmem:[#allocation7 + $0x1d] ss:$0 sm:$0xff]  ;;  %v1381_v26 = vld [vmem:[#allocation7 + $0x1c] ss:$0 sm:$0xff] }
  0x55   : > { %v1385_v27 = vld [vmem:[#allocation7 + $0x20] ss:$0 sm:$0xff]  ;;  %v1383_v28 = vld [vmem:[#allocation7 + $0x1e] ss:$0 sm:$0xff]  ;;  %v1384_v29 = vld [vmem:[#allocation7 + $0x1f] ss:$0 sm:$0xff] }
  0x56   : > { %248 = vrot.lane.b32.xlu1 %v225_v7, %s1604_s18  ;;  %v1386_v30 = vld [vmem:[#allocation7 + $0x21] ss:$0 sm:$0xff]  ;;  %v1388_v31 = vld [vmem:[#allocation7 + $0x23] ss:$0 sm:$0xff]  ;;  %v1387_v32 = vld [vmem:[#allocation7 + $0x22] ss:$0 sm:$0xff] }
  0x57   : > { %246 = vrot.lane.b32.xlu0 %v224_v8, %s1604_s18  ;;  %vm937_vm5 = vcmask 1042434   ;;  %vm939_vm6 = vcmask 1046534   ;;  %vm942_vm7 = vcmask 1043459   ;;  %vm944_vm8 = vcmask 1047559   ;;  %s1608_s23 = smov 16   ;;  %s1609_s25 = smov 32  }
  0x58   : > { %s1610_s30 = smov 48   ;;  %s1611_s4 = smov 64   ;;  %vm947_vm9 = vcmask 125952   ;;  %vm961_vm10 = vcmask 257152   ;;  %vm975_vm11 = vcmask 388352   ;;  %vm989_vm12 = vcmask 519552  }
  0x59   : > { %s1612_s7 = smov 80   ;;  %s1613_s8 = smov 96   ;;  %vm1007_vm13 = vcmask 650752   ;;  %vm1021_vm14 = vcmask 781952   ;;  %vm1035_vm15 = vcmask 913152   ;;  %vm1049_vm0 = vcmask 1044352  }
  0x5a   : > { %338 = vrot.lane.b32.xlu1 %v1358_v9, %s1604_s18  ;;  %s1614_s9 = smov 112   ;;  %vm1169_vm1 = vcmask 1043456   ;;  %s1352_s21 = sshll.u32 %s1752_s26, 4 }
  0x5b   : > { %336 = vrot.lane.b32.xlu0 %v1357_v10, %s1604_s18  ;;  %s203_s27 = scalar_lea.vmem [#allocation9], %s1352_s21  ;;  %s1398_s29 = sshll.u32 %s1657_s16, 8 }
  0x5c   : > { %s1262_s28 = sshll.u32 %s203_s27, 4  ;;  %p2299_p11 = scmp.ne.s32.totalorder %s2293_s6, 0  ;;  %s2240_s28 = int_to_ptr.vmem [resolvable:$true] %s1262_s28 }
  0x5d   : > { %s1615_s16 = smov [#allocation9]  }
  0x5e   : > { %421 = vrot.lane.b32.xlu1 %v1361_v11, %s1605_s20 }
  0x5f   : > { %340 = vrot.lane.b32.xlu0 %v1359_v12, %s1604_s18 }
  0x62   : > { %342 = vrot.lane.b32.xlu1 %v1360_v13, %s1604_s18 }
  0x63   : > { %423 = vrot.lane.b32.xlu0 %v1362_v14, %s1605_s20 }
  0x66   : > { %427 = vrot.lane.b32.xlu1 %v1364_v15, %s1605_s20 }
  0x67   : > { %425 = vrot.lane.b32.xlu0 %v1363_v16, %s1605_s20 }
  0x6a   : > { %561 = vrot.lane.b32.xlu1 %v1370_v17, %s1604_s18 }
  0x6b   : > { %559 = vrot.lane.b32.xlu0 %v1369_v18, %s1604_s18 }
  0x6e   : > { %644 = vrot.lane.b32.xlu1 %v1373_v19, %s1605_s20 }
  0x6f   : > { %563 = vrot.lane.b32.xlu0 %v1371_v20, %s1604_s18 }
  0x72   : > { %565 = vrot.lane.b32.xlu1 %v1372_v21, %s1604_s18 }
  0x73   : > { %646 = vrot.lane.b32.xlu0 %v1374_v22, %s1605_s20 }
  0x76   : > { %650 = vrot.lane.b32.xlu1 %v1376_v23, %s1605_s20 }
  0x77   : > { %648 = vrot.lane.b32.xlu0 %v1375_v24, %s1605_s20 }
  0x7a   : > { %784 = vrot.lane.b32.xlu1 %v1382_v25, %s1604_s18 }
  0x7b   : > { %782 = vrot.lane.b32.xlu0 %v1381_v26, %s1604_s18 }
  0x7e   : > { %867 = vrot.lane.b32.xlu1 %v1385_v27, %s1605_s20 }
  0x7f   : > { %786 = vrot.lane.b32.xlu0 %v1383_v28, %s1604_s18 }
  0x82   : > { %788 = vrot.lane.b32.xlu1 %v1384_v29, %s1604_s18 }
  0x83   : > { %869 = vrot.lane.b32.xlu0 %v1386_v30, %s1605_s20 }
  0x86   : > { %873 = vrot.lane.b32.xlu1 %v1388_v31, %s1605_s20 }
  0x87   : > { %871 = vrot.lane.b32.xlu0 %v1387_v32, %s1605_s20 }
  0xbc   : > { %v239_v33 = vpop.permute.xlu1 %238 }
  0xbd   : > { %v235_v34 = vpop.permute.xlu0 %234  ;;  %261 = vst.msk [vmem:[#allocation2 + $0x19] sm:$0xff] %vm258_vm2, %v239_v33 }
  0xbe   : > { %259 = vst.msk [vmem:[#allocation2 + $0x1] sm:$0xff] %vm258_vm2, %v235_v34 }
  0xc0   : > { %v241_v35 = vpop.permute.xlu1 %240 }
  0xc1   : > { %v237_v36 = vpop.permute.xlu0 %236  ;;  %262 = vst.msk [vmem:[#allocation2 + $0x21] sm:$0xff] %vm258_vm2, %v241_v35 }
  0xc2   : > { %260 = vst.msk [vmem:[#allocation2 + $0x9] sm:$0xff] %vm258_vm2, %v237_v36 }
  0xc4   : > { %v245_v37 = vpop.permute.xlu1 %244  ;;  %v1822_v47 = vld [vmem:[#allocation2 + $0x18] sm:$0xff] }
  0xc5   : > { %v243_v38 = vpop.permute.xlu0 %242  ;;  %264 = vst.msk [vmem:[#allocation2 + $0x39] sm:$0xff] %vm258_vm2, %v245_v37  ;;  %v1814_v42 = vld [vmem:[#allocation2] sm:$0xff] }
  0xc6   : > { %263 = vst.msk [vmem:[#allocation2 + $0x31] sm:$0xff] %vm258_vm2, %v243_v38  ;;  %v1862_v10 = vld [vmem:[#allocation2 + $0x1] sm:$0xff]  ;;  %v1870_v15 = vld [vmem:[#allocation2 + $0x19] sm:$0xff] }
  0xc8   : > { %v249_v39 = vpop.permute.xlu1 %248  ;;  %v1824_v48 = vld [vmem:[#allocation2 + $0x20] sm:$0xff] }
  0xc9   : > { %v247_v40 = vpop.permute.xlu0 %246  ;;  %266 = vst.msk [vmem:[#allocation2 + $0x51] sm:$0xff] %vm258_vm2, %v249_v39  ;;  %v1816_v43 = vld [vmem:[#allocation2 + $0x8] sm:$0xff] }
  0xca   : > { %265 = vst.msk [vmem:[#allocation2 + $0x49] sm:$0xff] %vm258_vm2, %v247_v40  ;;  %v1864_v11 = vld [vmem:[#allocation2 + $0x9] sm:$0xff]  ;;  %v1872_v16 = vld [vmem:[#allocation2 + $0x21] sm:$0xff]  ;;  %vm1165_vm2 = vcmask 31744  }
  0xcc   : > { %v339_v46 = vpop.permute.xlu1 %338  ;;  %v1880_v21 = vld [vmem:[#allocation2 + $0x39] sm:$0xff] }
  0xcd   : > { %v337_v41 = vpop.permute.xlu0 %336  ;;  %v350_v49 = vmul.f32 %v339_v46, %v1822_v47  ;;  %v351_v50 = vmul.f32 %v339_v46, %v1824_v48  ;;  %v1830_v52 = vld [vmem:[#allocation2 + $0x30] sm:$0xff]  ;;  %v1832_v53 = vld [vmem:[#allocation2 + $0x38] sm:$0xff] }
  0xce   : > { %v348_v44 = vmul.f32 %v337_v41, %v1814_v42  ;;  %v349_v45 = vmul.f32 %v337_v41, %v1816_v43  ;;  %v1878_v20 = vld [vmem:[#allocation2 + $0x31] sm:$0xff] }
  0xd0   : > { %366 = vrot.lane.b32.xlu1 %v349_v45, %s1606_s17  ;;  %364 = vrot.lane.b32.xlu0 %v348_v44, %s1606_s17  ;;  %v422_v56 = vpop.permute.xlu1 %421  ;;  %v1896_v32 = vld [vmem:[#allocation2 + $0x51] sm:$0xff]  ;;  %v1910_v44 = vld [vmem:[#allocation2 + $0x2] sm:$0xff] }
  0xd1   : > { %v341_v51 = vpop.permute.xlu0 %340  ;;  %v433_v57 = vmul.f32 %v422_v56, %v1814_v42  ;;  %v434_v58 = vmul.f32 %v422_v56, %v1816_v43  ;;  %v1846_v63 = vld [vmem:[#allocation2 + $0x48] sm:$0xff]  ;;  %v1848_v0 = vld [vmem:[#allocation2 + $0x50] sm:$0xff] }
  0xd2   : > { %v352_v54 = vmul.f32 %v341_v51, %v1830_v52  ;;  %v353_v55 = vmul.f32 %v341_v51, %v1832_v53  ;;  %v1894_v31 = vld [vmem:[#allocation2 + $0x49] sm:$0xff]  ;;  %v1918_v51 = vld [vmem:[#allocation2 + $0x1a] sm:$0xff] }
  0xd3   : > { %v1912_v45 = vld [vmem:[#allocation2 + $0xa] sm:$0xff] }
  0xd4   : > { %370 = vrot.lane.b32.xlu1 %v351_v50, %s1606_s17  ;;  %368 = vrot.lane.b32.xlu0 %v350_v49, %s1606_s17  ;;  %v343_v62 = vpop.permute.xlu1 %342 }
  0xd5   : > { %v424_v59 = vpop.permute.xlu0 %423  ;;  %v354_v1 = vmul.f32 %v343_v62, %v1846_v63  ;;  %v355_v2 = vmul.f32 %v343_v62, %v1848_v0 }
  0xd6   : > { %v435_v60 = vmul.f32 %v424_v59, %v1822_v47  ;;  %v436_v61 = vmul.f32 %v424_v59, %v1824_v48  ;;  %v1928_v59 = vld [vmem:[#allocation2 + $0x3a] sm:$0xff] }
  0xd8   : > { %374 = vrot.lane.b32.xlu1 %v353_v55, %s1606_s17  ;;  %372 = vrot.lane.b32.xlu0 %v352_v54, %s1606_s17  ;;  %v428_v6 = vpop.permute.xlu1 %427  ;;  %v1920_v54 = vld [vmem:[#allocation2 + $0x22] sm:$0xff] }
  0xd9   : > { %v426_v3 = vpop.permute.xlu0 %425  ;;  %v439_v7 = vmul.f32 %v428_v6, %v1846_v63  ;;  %v440_v8 = vmul.f32 %v428_v6, %v1848_v0 }
  0xda   : > { %v437_v4 = vmul.f32 %v426_v3, %v1830_v52  ;;  %v438_v5 = vmul.f32 %v426_v3, %v1832_v53 }
  0xdc   : > { %451 = vrot.lane.b32.xlu1 %v434_v58, %s1607_s22  ;;  %449 = vrot.lane.b32.xlu0 %v433_v57, %s1607_s22  ;;  %v562_v14 = vpop.permute.xlu1 %561  ;;  %v1926_v58 = vld [vmem:[#allocation2 + $0x32] sm:$0xff] }
  0xdd   : > { %v560_v9 = vpop.permute.xlu0 %559  ;;  %v573_v17 = vmul.f32 %v562_v14, %v1870_v15  ;;  %v574_v18 = vmul.f32 %v562_v14, %v1872_v16 }
  0xde   : > { %v571_v12 = vmul.f32 %v560_v9, %v1862_v10  ;;  %v572_v13 = vmul.f32 %v560_v9, %v1864_v11 }
  0xe0   : > { %455 = vrot.lane.b32.xlu1 %v436_v61, %s1607_s22  ;;  %453 = vrot.lane.b32.xlu0 %v435_v60, %s1607_s22  ;;  %v645_v24 = vpop.permute.xlu1 %644 }
  0xe1   : > { %v564_v19 = vpop.permute.xlu0 %563  ;;  %v656_v25 = vmul.f32 %v645_v24, %v1862_v10  ;;  %v657_v26 = vmul.f32 %v645_v24, %v1864_v11 }
  0xe2   : > { %v575_v22 = vmul.f32 %v564_v19, %v1878_v20  ;;  %v576_v23 = vmul.f32 %v564_v19, %v1880_v21 }
  0xe4   : > { %378 = vrot.lane.b32.xlu1 %v355_v2, %s1606_s17  ;;  %376 = vrot.lane.b32.xlu0 %v354_v1, %s1606_s17  ;;  %v566_v30 = vpop.permute.xlu1 %565 }
  0xe5   : > { %v647_v27 = vpop.permute.xlu0 %646  ;;  %v577_v33 = vmul.f32 %v566_v30, %v1894_v31  ;;  %v578_v34 = vmul.f32 %v566_v30, %v1896_v32 }
  0xe6   : > { %v658_v28 = vmul.f32 %v647_v27, %v1870_v15  ;;  %v659_v29 = vmul.f32 %v647_v27, %v1872_v16 }
  0xe8   : > { %459 = vrot.lane.b32.xlu1 %v438_v5, %s1607_s22  ;;  %457 = vrot.lane.b32.xlu0 %v437_v4, %s1607_s22  ;;  %v651_v38 = vpop.permute.xlu1 %650 }
  0xe9   : > { %v649_v35 = vpop.permute.xlu0 %648  ;;  %v662_v39 = vmul.f32 %v651_v38, %v1894_v31  ;;  %v663_v40 = vmul.f32 %v651_v38, %v1896_v32 }
  0xea   : > { %v660_v36 = vmul.f32 %v649_v35, %v1878_v20  ;;  %v661_v37 = vmul.f32 %v649_v35, %v1880_v21 }
  0xec   : > { %463 = vrot.lane.b32.xlu1 %v440_v8, %s1607_s22  ;;  %461 = vrot.lane.b32.xlu0 %v439_v7, %s1607_s22  ;;  %v785_v50 = vpop.permute.xlu1 %784  ;;  %v1942_v7 = vld [vmem:[#allocation2 + $0x4a] sm:$0xff]  ;;  %v1944_v8 = vld [vmem:[#allocation2 + $0x52] sm:$0xff] }
  0xed   : > { %v783_v41 = vpop.permute.xlu0 %782  ;;  %v796_v55 = vmul.f32 %v785_v50, %v1918_v51  ;;  %v797_v56 = vmul.f32 %v785_v50, %v1920_v54  ;;  %v1365_v50 = vld [vmem:[#allocation7 + $0xc] ss:$0 sm:$0xff] }
  0xee   : > { %v794_v46 = vmul.f32 %v783_v41, %v1910_v44  ;;  %v795_v49 = vmul.f32 %v783_v41, %v1912_v45 }
  0xf0   : > { %589 = vrot.lane.b32.xlu1 %v572_v13, %s1606_s17  ;;  %587 = vrot.lane.b32.xlu0 %v571_v12, %s1606_s17  ;;  %v868_v62 = vpop.permute.xlu1 %867 }
  0xf1   : > { %v787_v57 = vpop.permute.xlu0 %786  ;;  %v879_v1 = vmul.f32 %v868_v62, %v1910_v44  ;;  %v880_v2 = vmul.f32 %v868_v62, %v1912_v45 }
  0xf2   : > { %v798_v60 = vmul.f32 %v787_v57, %v1926_v58  ;;  %v799_v61 = vmul.f32 %v787_v57, %v1928_v59 }
  0xf4   : > { %593 = vrot.lane.b32.xlu1 %v574_v18, %s1606_s17  ;;  %591 = vrot.lane.b32.xlu0 %v573_v17, %s1606_s17  ;;  %v789_v6 = vpop.permute.xlu1 %788 }
  0xf5   : > { %v870_v3 = vpop.permute.xlu0 %869  ;;  %v800_v9 = vmul.f32 %v789_v6, %v1942_v7  ;;  %v801_v12 = vmul.f32 %v789_v6, %v1944_v8 }
  0xf6   : > { %v881_v4 = vmul.f32 %v870_v3, %v1918_v51  ;;  %v882_v5 = vmul.f32 %v870_v3, %v1920_v54 }
  0xf8   : > { %597 = vrot.lane.b32.xlu1 %v576_v23, %s1606_s17  ;;  %595 = vrot.lane.b32.xlu0 %v575_v22, %s1606_s17  ;;  %v874_v18 = vpop.permute.xlu1 %873  ;;  %v1353_v23 = vld [vmem:[#allocation7] ss:$0 sm:$0xff] }
  0xf9   : > { %v872_v13 = vpop.permute.xlu0 %871  ;;  %v885_v19 = vmul.f32 %v874_v18, %v1942_v7  ;;  %v886_v22 = vmul.f32 %v874_v18, %v1944_v8  ;;  %v304_v24 = vmul.f32 %v1353_v23, %v1816_v43 }
  0xfa   : > { %v883_v14 = vmul.f32 %v872_v13, %v1926_v58  ;;  %v884_v17 = vmul.f32 %v872_v13, %v1928_v59 }
  0xfc   : > { %674 = vrot.lane.b32.xlu1 %v657_v26, %s1607_s22  ;;  %672 = vrot.lane.b32.xlu0 %v656_v25, %s1607_s22  ;;  %v303_v25 = vmul.f32 %v1353_v23, %v1814_v42 }
 0x100   : > { %678 = vrot.lane.b32.xlu1 %v659_v29, %s1607_s22  ;;  %676 = vrot.lane.b32.xlu0 %v658_v28, %s1607_s22  ;;  %v1354_v28 = vld [vmem:[#allocation7 + $0x1] ss:$0 sm:$0xff] }
 0x104   : > { %601 = vrot.lane.b32.xlu1 %v578_v34, %s1606_s17  ;;  %599 = vrot.lane.b32.xlu0 %v577_v33, %s1606_s17  ;;  %v306_v33 = vmul.f32 %v1354_v28, %v1824_v48  ;;  %v305_v34 = vmul.f32 %v1354_v28, %v1822_v47  ;;  %v519_v47 = vmul.f32 %v1365_v50, %v1864_v11 }
 0x108   : > { %682 = vrot.lane.b32.xlu1 %v661_v37, %s1607_s22  ;;  %680 = vrot.lane.b32.xlu0 %v660_v36, %s1607_s22  ;;  %v1355_v37 = vld [vmem:[#allocation7 + $0x2] ss:$0 sm:$0xff] }
 0x109   : > { %v307_v43 = vmul.f32 %v1355_v37, %v1830_v52 }
 0x10c   : > { %686 = vrot.lane.b32.xlu1 %v663_v40, %s1607_s22  ;;  %684 = vrot.lane.b32.xlu0 %v662_v39, %s1607_s22  ;;  %v308_v40 = vmul.f32 %v1355_v37, %v1832_v53 }
 0x110   : > { %812 = vrot.lane.b32.xlu1 %v795_v49, %s1606_s17  ;;  %810 = vrot.lane.b32.xlu0 %v794_v46, %s1606_s17 }
 0x114   : > { %816 = vrot.lane.b32.xlu1 %v797_v56, %s1606_s17  ;;  %814 = vrot.lane.b32.xlu0 %v796_v55, %s1606_s17 }
 0x118   : > { %820 = vrot.lane.b32.xlu1 %v799_v61, %s1606_s17  ;;  %818 = vrot.lane.b32.xlu0 %v798_v60, %s1606_s17  ;;  %v518_v60 = vmul.f32 %v1365_v50, %v1862_v10  ;;  %v1366_v61 = vld [vmem:[#allocation7 + $0xd] ss:$0 sm:$0xff] }
 0x11c   : > { %897 = vrot.lane.b32.xlu1 %v880_v2, %s1607_s22  ;;  %895 = vrot.lane.b32.xlu0 %v879_v1, %s1607_s22 }
 0x120   : > { %901 = vrot.lane.b32.xlu1 %v882_v5, %s1607_s22  ;;  %899 = vrot.lane.b32.xlu0 %v881_v4, %s1607_s22  ;;  %v521_v4 = vmul.f32 %v1366_v61, %v1872_v16  ;;  %v520_v5 = vmul.f32 %v1366_v61, %v1870_v15 }
 0x124   : > { %824 = vrot.lane.b32.xlu1 %v801_v12, %s1606_s17  ;;  %822 = vrot.lane.b32.xlu0 %v800_v9, %s1606_s17  ;;  %s1260_s17 = scalar_lea.hbm %s2283_s3, %s1398_s29 }
 0x128   : > { %905 = vrot.lane.b32.xlu1 %v884_v17, %s1607_s22  ;;  %903 = vrot.lane.b32.xlu0 %v883_v14, %s1607_s22  ;;  %v1367_v14 = vld [vmem:[#allocation7 + $0xe] ss:$0 sm:$0xff]  ;;  %v1356_v17 = vld [vmem:[#allocation7 + $0x3] ss:$0 sm:$0xff] }
 0x129   : > { %v523_v10 = vmul.f32 %v1367_v14, %v1880_v21  ;;  %v309_v23 = vmul.f32 %v1356_v17, %v1846_v63 }
 0x12c   : > { %909 = vrot.lane.b32.xlu1 %v886_v22, %s1607_s22  ;;  %907 = vrot.lane.b32.xlu0 %v885_v19, %s1607_s22  ;;  %v522_v19 = vmul.f32 %v1367_v14, %v1878_v20  ;;  %v310_v22 = vmul.f32 %v1356_v17, %v1848_v0  ;;  %s1248_s22 = scalar_lea.sflag [#allocation6], %s1752_s26 }
 0x142   : > { %v367_v26 = vpop.permute.xlu1 %366  ;;  %v365_v27 = vpop.permute.xlu0 %364 }
 0x143   : > { %v389_v29 = vadd.f32 %v367_v26, %v304_v24  ;;  %v388_v30 = vadd.f32 %v365_v27, %v303_v25  ;;  %v1368_v25 = vld [vmem:[#allocation7 + $0xf] ss:$0 sm:$0xff] }
 0x144   : > { %v524_v21 = vmul.f32 %v1368_v25, %v1894_v31  ;;  %v1378_v31 = vld [vmem:[#allocation7 + $0x19] ss:$0 sm:$0xff] }
 0x146   : > { %v371_v35 = vpop.permute.xlu1 %370  ;;  %v369_v36 = vpop.permute.xlu0 %368 }
 0x147   : > { %v391_v38 = vadd.f32 %v371_v35, %v306_v33  ;;  %v390_v39 = vadd.f32 %v369_v36, %v305_v34  ;;  %v525_v35 = vmul.f32 %v1368_v25, %v1896_v32 }
 0x14a   : > { %v375_v41 = vpop.permute.xlu1 %374  ;;  %v373_v42 = vpop.permute.xlu0 %372 }
 0x14b   : > { %v393_v46 = vadd.f32 %v375_v41, %v308_v40  ;;  %v392_v49 = vadd.f32 %v373_v42, %v307_v43  ;;  %v1377_v43 = vld [vmem:[#allocation7 + $0x18] ss:$0 sm:$0xff] }
 0x14c   : > { %v741_v32 = vmul.f32 %v1377_v43, %v1910_v44 }
 0x14e   : > { %v452_v55 = vpop.permute.xlu1 %451  ;;  %v450_v56 = vpop.permute.xlu0 %449 }
 0x14f   : > { %v474_v57 = vadd.f32 %v452_v55, %v389_v29  ;;  %v473_v48 = vadd.f32 %v450_v56, %v388_v30  ;;  %v742_v56 = vmul.f32 %v1377_v43, %v1912_v45  ;;  %v1379_v45 = vld [vmem:[#allocation7 + $0x1a] ss:$0 sm:$0xff] }
 0x151   : > { %v527_v62 = vadd.f32 %v519_v47, %v474_v57  ;;  %v526_v1 = vadd.f32 %v518_v60, %v473_v48 }
 0x152   : > { %v456_v2 = vpop.permute.xlu1 %455  ;;  %v454_v53 = vpop.permute.xlu0 %453 }
 0x153   : > { %v476_v3 = vadd.f32 %v456_v2, %v391_v38  ;;  %v475_v52 = vadd.f32 %v454_v53, %v390_v39 }
 0x155   : > { %v529_v6 = vadd.f32 %v521_v4, %v476_v3  ;;  %v528_v9 = vadd.f32 %v520_v5, %v475_v52 }
 0x156   : > { %v379_v12 = vpop.permute.xlu1 %378  ;;  %v377_v13 = vpop.permute.xlu0 %376 }
 0x157   : > { %v395_v15 = vadd.f32 %v379_v12, %v310_v22  ;;  %v394_v26 = vadd.f32 %v377_v13, %v309_v23 }
 0x15a   : > { %v460_v11 = vpop.permute.xlu1 %459  ;;  %v458_v18 = vpop.permute.xlu0 %457 }
 0x15b   : > { %v478_v24 = vadd.f32 %v460_v11, %v393_v46  ;;  %v477_v16 = vadd.f32 %v458_v18, %v392_v49  ;;  %v746_v11 = vmul.f32 %v1379_v45, %v1928_v59  ;;  %v745_v18 = vmul.f32 %v1379_v45, %v1926_v58 }
 0x15d   : > { %v531_v27 = vadd.f32 %v523_v10, %v478_v24  ;;  %v530_v28 = vadd.f32 %v522_v19, %v477_v16  ;;  %v1380_v10 = vld [vmem:[#allocation7 + $0x1b] ss:$0 sm:$0xff] }
 0x15e   : > { %v464_v29 = vpop.permute.xlu1 %463  ;;  %v462_v30 = vpop.permute.xlu0 %461 }
 0x15f   : > { %v480_v33 = vadd.f32 %v464_v29, %v395_v15  ;;  %v479_v34 = vadd.f32 %v462_v30, %v394_v26  ;;  %v748_v15 = vmul.f32 %v1380_v10, %v1944_v8  ;;  %v747_v26 = vmul.f32 %v1380_v10, %v1942_v7 }
 0x161   : > { %v533_v20 = vadd.f32 %v525_v35, %v480_v33  ;;  %v532_v36 = vadd.f32 %v524_v21, %v479_v34 }
 0x162   : > { %v590_v0 = vpop.permute.xlu1 %589  ;;  %v588_v37 = vpop.permute.xlu0 %587 }
 0x163   : > { %v612_v41 = vadd.f32 %v590_v0, %v527_v62  ;;  %v611_v42 = vadd.f32 %v588_v37, %v526_v1  ;;  %v744_v62 = vmul.f32 %v1378_v31, %v1920_v54  ;;  %v743_v1 = vmul.f32 %v1378_v31, %v1918_v51 }
 0x166   : > { %v594_v63 = vpop.permute.xlu1 %593  ;;  %v592_v38 = vpop.permute.xlu0 %591 }
 0x167   : > { %v614_v57 = vadd.f32 %v594_v63, %v529_v6  ;;  %v613_v48 = vadd.f32 %v592_v38, %v528_v9 }
 0x16a   : > { %v598_v39 = vpop.permute.xlu1 %597  ;;  %v596_v40 = vpop.permute.xlu0 %595 }
 0x16b   : > { %v616_v13 = vadd.f32 %v598_v39, %v531_v27  ;;  %v615_v44 = vadd.f32 %v596_v40, %v530_v28 }
 0x16e   : > { %v675_v46 = vpop.permute.xlu1 %674  ;;  %v673_v49 = vpop.permute.xlu0 %672 }
 0x16f   : > { %v697_v50 = vadd.f32 %v675_v46, %v612_v41  ;;  %v696_v55 = vadd.f32 %v673_v49, %v611_v42 }
 0x171   : > { %v750_v47 = vadd.f32 %v742_v56, %v697_v50  ;;  %v749_v60 = vadd.f32 %v741_v32, %v696_v55 }
 0x172   : > { %v679_v61 = vpop.permute.xlu1 %678  ;;  %v677_v2 = vpop.permute.xlu0 %676 }
 0x173   : > { %v699_v53 = vadd.f32 %v679_v61, %v614_v57  ;;  %v698_v3 = vadd.f32 %v677_v2, %v613_v48 }
 0x175   : > { %v752_v52 = vadd.f32 %v744_v62, %v699_v53  ;;  %v751_v4 = vadd.f32 %v743_v1, %v698_v3 }
 0x176   : > { %v602_v5 = vpop.permute.xlu1 %601  ;;  %v600_v12 = vpop.permute.xlu0 %599 }
 0x177   : > { %v618_v19 = vadd.f32 %v602_v5, %v533_v20  ;;  %v617_v54 = vadd.f32 %v600_v12, %v532_v36 }
 0x17a   : > { %v683_v14 = vpop.permute.xlu1 %682  ;;  %v681_v6 = vpop.permute.xlu0 %680 }
 0x17b   : > { %v701_v9 = vadd.f32 %v683_v14, %v616_v13  ;;  %v700_v17 = vadd.f32 %v681_v6, %v615_v44 }
 0x17d   : > { %v754_v22 = vadd.f32 %v746_v11, %v701_v9  ;;  %v753_v51 = vadd.f32 %v745_v18, %v700_v17 }
 0x17e   : > { %v687_v23 = vpop.permute.xlu1 %686  ;;  %v685_v24 = vpop.permute.xlu0 %684 }
 0x17f   : > { %v703_v16 = vadd.f32 %v687_v23, %v618_v19  ;;  %v702_v25 = vadd.f32 %v685_v24, %v617_v54 }
 0x181   : > { %v756_v27 = vadd.f32 %v748_v15, %v703_v16  ;;  %v1982_v28 = vadd.f32 %v747_v26, %v702_v25 }
 0x182   : > { %v813_v29 = vpop.permute.xlu1 %812  ;;  %v811_v59 = vpop.permute.xlu0 %810 }
 0x183   : > { %v835_v35 = vadd.f32 %v813_v29, %v750_v47  ;;  %v834_v21 = vadd.f32 %v811_v59, %v749_v60 }
 0x186   : > { %v817_v30 = vpop.permute.xlu1 %816  ;;  %v815_v58 = vpop.permute.xlu0 %814 }
 0x187   : > { %v837_v8 = vadd.f32 %v817_v30, %v752_v52  ;;  %v836_v7 = vadd.f32 %v815_v58, %v751_v4 }
 0x18a   : > { %v821_v33 = vpop.permute.xlu1 %820  ;;  %v819_v34 = vpop.permute.xlu0 %818 }
 0x18b   : > { %v839_v63 = vadd.f32 %v821_v33, %v754_v22  ;;  %v838_v38 = vadd.f32 %v819_v34, %v753_v51 }
 0x18e   : > { %v898_v20 = vpop.permute.xlu1 %897  ;;  %v896_v36 = vpop.permute.xlu0 %895 }
 0x18f   : > { %v1984_v0 = vadd.f32 %v898_v20, %v835_v35  ;;  %v1986_v37 = vadd.f32 %v896_v36, %v834_v21 }
 0x191   : > { %v1066_v39 = vrot.slane %v1984_v0, 1  ;;  %v1079_v40 = vrot.slane %v1984_v0, 2  ;;  %v1992_v43 = vcombine.high %v1984_v0, %v1984_v0  ;;  %v1092_v41 = vrot.slane %v1984_v0, 3 }
 0x192   : > { %v949_v42 = vrot.slane %v1986_v37, 1  ;;  %v963_v46 = vrot.slane %v1986_v37, 2  ;;  %v1999_v49 = vcombine.high %v1986_v37, %v1986_v37  ;;  %v902_v50 = vpop.permute.xlu1 %901  ;;  %v900_v55 = vpop.permute.xlu0 %899  ;;  %v977_v56 = vrot.slane %v1986_v37, 3 }
 0x193   : > { %v2002_v32 = vadd.f32 %v902_v50, %v837_v8  ;;  %v2004_v31 = vadd.f32 %v900_v55, %v836_v7  ;;  %v1122_v57 = vrot.slane %v1992_v43, 1  ;;  %v1135_v47 = vrot.slane %v1992_v43, 2 }
 0x194   : > { %v1009_v48 = vrot.slane %v1999_v49, 1  ;;  %v1023_v60 = vrot.slane %v1999_v49, 2  ;;  %v1148_v61 = vrot.slane %v1992_v43, 3  ;;  %v1037_v62 = vrot.slane %v1999_v49, 3 }
 0x195   : > { %v1055_v2 = vrot.slane %v2002_v32, 7  ;;  %v2014_v53 = vcombine.high %v2002_v32, %v2002_v32  ;;  %v2018_v3 = vcombine.high %v2004_v31, %v2004_v31  ;;  %v1067_v4 = vsel %vm932_vm3, %v2002_v32, %v1066_v39 }
 0x196   : > { %v825_v1 = vpop.permute.xlu1 %824  ;;  %v823_v52 = vpop.permute.xlu0 %822  ;;  %v950_v5 = vsel %vm932_vm3, %v2004_v31, %v949_v42  ;;  %v1080_v12 = vrot.slane %v2002_v32, 1  ;;  %v964_v45 = vrot.slane %v2004_v31, 1  ;;  %v931_v13 = vrot.slane %v2004_v31, 7 }
 0x197   : > { %v841_v44 = vadd.f32 %v825_v1, %v756_v27  ;;  %v1068_v14 = vsel %vm934_vm4, %v2002_v32, %v1067_v4  ;;  %v951_v6 = vsel %vm934_vm4, %v2004_v31, %v950_v5  ;;  %v1093_v11 = vrot.slane %v2002_v32, 2 }
 0x198   : > { %v1081_v9 = vsel %vm932_vm3, %v1080_v12, %v1079_v40  ;;  %v965_v17 = vsel %vm932_vm3, %v964_v45, %v963_v46  ;;  %v978_v18 = vrot.slane %v2004_v31, 2  ;;  %v1109_v54 = vrot.slane %v2014_v53, 7 }
 0x199   : > { %v1082_v10 = vsel %vm934_vm4, %v1080_v12, %v1081_v9  ;;  %v966_v19 = vsel %vm934_vm4, %v964_v45, %v965_v17  ;;  %v995_v22 = vrot.slane %v2018_v3, 7  ;;  %v1094_v24 = vsel %vm932_vm3, %v1093_v11, %v1092_v41 }
 0x19a   : > { %v906_v51 = vpop.permute.xlu1 %905  ;;  %v904_v23 = vpop.permute.xlu0 %903  ;;  %v979_v16 = vsel %vm932_vm3, %v978_v18, %v977_v56  ;;  %v1123_v25 = vsel %vm932_vm3, %v2014_v53, %v1122_v57  ;;  %v1010_v15 = vsel %vm932_vm3, %v2018_v3, %v1009_v48  ;;  %v1095_v29 = vsel %vm934_vm4, %v1093_v11, %v1094_v24 }
 0x19b   : > { %v2046_v26 = vadd.f32 %v906_v51, %v839_v63  ;;  %v2048_v27 = vadd.f32 %v904_v23, %v838_v38  ;;  %v980_v59 = vsel %vm934_vm4, %v978_v18, %v979_v16  ;;  %v1110_v30 = vsel %vm932_vm3, %v1109_v54, %v1992_v43 }
 0x19c   : > { %v996_v58 = vsel %vm932_vm3, %v995_v22, %v1999_v49  ;;  %v2060_v33 = vsel %vm934_vm4, %v2014_v53, %v1123_v25  ;;  %v2064_v34 = vsel %vm934_vm4, %v2018_v3, %v1010_v15  ;;  %v840_v35 = vadd.f32 %v823_v52, %v1982_v28 }
 0x19d   : > { %v1058_v21 = vrot.slane %v2046_v26, 6  ;;  %v2070_v20 = vcombine.high %v2046_v26, %v2046_v26  ;;  %v2074_v36 = vcombine.high %v2048_v27, %v2048_v27  ;;  %v1069_v63 = vrot.slane %v2046_v26, 7 }
 0x19e   : > { %v910_v8 = vpop.permute.xlu1 %909  ;;  %v908_v7 = vpop.permute.xlu0 %907  ;;  %v952_v38 = vrot.slane %v2048_v27, 7  ;;  %v1083_v39 = vsel %vm937_vm5, %v2046_v26, %v1082_v10  ;;  %v967_v28 = vsel %vm937_vm5, %v2048_v27, %v966_v19  ;;  %v1096_v56 = vrot.slane %v2046_v26, 1 }
 0x19f   : > { %v2082_v40 = vadd.f32 %v910_v8, %v841_v44  ;;  %v2084_v41 = vadd.f32 %v908_v7, %v840_v35  ;;  %v1084_v42 = vsel %vm939_vm6, %v2046_v26, %v1083_v39  ;;  %v968_v46 = vsel %vm939_vm6, %v2048_v27, %v967_v28 }
 0x1a0   : > { %v1070_v50 = vsel %vm937_vm5, %v1069_v63, %v1068_v14  ;;  %v953_v55 = vsel %vm937_vm5, %v952_v38, %v951_v6  ;;  %v981_v57 = vrot.slane %v2048_v27, 1  ;;  %v1097_v6 = vsel %vm937_vm5, %v1096_v56, %v1095_v29 }
 0x1a1   : > { %v2096_v48 = vcombine.high %v2082_v40, %v2082_v40  ;;  %v2100_v1 = vcombine.high %v2084_v41, %v2084_v41  ;;  %v1071_v52 = vsel %vm939_vm6, %v1069_v63, %v1070_v50  ;;  %v1072_v4 = vrot.slane %v2082_v40, 6 }
 0x1a2   : > { %v954_v5 = vsel %vm939_vm6, %v952_v38, %v953_v55  ;;  %v955_v12 = vrot.slane %v2084_v41, 6  ;;  %v1085_v45 = vrot.slane %v2082_v40, 7  ;;  %v969_v44 = vrot.slane %v2084_v41, 7 }
 0x1a3   : > { %v1073_v14 = vsel %vm942_vm7, %v1072_v4, %v1071_v52  ;;  %v982_v9 = vsel %vm937_vm5, %v981_v57, %v980_v59  ;;  %v1111_v17 = vsel %vm934_vm4, %v1109_v54, %v1110_v30  ;;  %v1098_v16 = vsel %vm939_vm6, %v1096_v56, %v1097_v6 }
 0x1a4   : > { %v1074_v11 = vsel %vm944_vm8, %v1072_v4, %v1073_v14  ;;  %v956_v18 = vsel %vm942_vm7, %v955_v12, %v954_v5  ;;  %v1086_v10 = vsel %vm942_vm7, %v1085_v45, %v1084_v42  ;;  %v970_v19 = vsel %vm942_vm7, %v969_v44, %v968_v46 }
 0x1a5   : > { %1075 = vrot.lane.b32.xlu1 %v1074_v11, %s1608_s23  ;;  %v957_v51 = vsel %vm944_vm8, %v955_v12, %v956_v18  ;;  %v1087_v23 = vsel %vm944_vm8, %v1085_v45, %v1086_v10  ;;  %v971_v24 = vsel %vm944_vm8, %v969_v44, %v970_v19  ;;  %v1099_v54 = vsel %vm942_vm7, %v2082_v40, %v1098_v16 }
 0x1a6   : > { %958 = vrot.lane.b32.xlu0 %v957_v51, %s1608_s23  ;;  %v983_v25 = vsel %vm939_vm6, %v981_v57, %v982_v9  ;;  %v1112_v15 = vrot.slane %v2070_v20, 6  ;;  %v1115_v29 = vrot.slane %v2096_v48, 5  ;;  %v1100_v59 = vsel %vm944_vm8, %v2082_v40, %v1099_v54  ;;  %s1527_s23 = scalar_lea.vmem %s2240_s28, 256 }
 0x1a7   : > { %v984_v30 = vsel %vm942_vm7, %v2084_v41, %v983_v25  ;;  %v997_v35 = vsel %vm934_vm4, %v995_v22, %v996_v58  ;;  %v998_v8 = vrot.slane %v2074_v36, 6  ;;  %v1001_v38 = vrot.slane %v2100_v1, 5  ;;  %p1528_p3 = scmp.ne.s32.totalorder %s2240_s28, %s1527_s23 }
 0x1a8   : > { %v985_v7 = vsel %vm944_vm8, %v2084_v41, %v984_v30  ;;  %v1113_v63 = vsel %vm937_vm5, %v1112_v15, %v1111_v17  ;;  %v1125_v39 = vrot.slane %v2070_v20, 7  ;;  %v1128_v46 = vrot.slane %v2096_v48, 6 }
 0x1a9   : > { %1088 = vrot.lane.b32.xlu1 %v1087_v23, %s1609_s25  ;;  %v1114_v28 = vsel %vm939_vm6, %v1112_v15, %v1113_v63  ;;  %v999_v42 = vsel %vm937_vm5, %v998_v8, %v997_v35  ;;  %v1012_v22 = vrot.slane %v2074_v36, 7  ;;  %v1015_v56 = vrot.slane %v2100_v1, 6  ;;  %p1529_p7 = pnand %p1528_p3, %p2299_p11 }
 0x1aa   : > { %972 = vrot.lane.b32.xlu0 %v971_v24, %s1609_s25  ;;  %v1116_v58 = vsel %vm942_vm7, %v1115_v29, %v1114_v28  ;;  %v1000_v50 = vsel %vm939_vm6, %v998_v8, %v999_v42  ;;  %v1126_v55 = vsel %vm937_vm5, %v1125_v39, %v2060_v33  ;;  %v1136_v14 = vrot.slane %v2014_v53, 1  ;;  %s1531_s25 = sshll.u32 %s1615_s16, 4  ;;  %s1532_s25 = int_to_ptr.vmem [resolvable:$false] %s1531_s25 }
 0x1ab   : > { %v1117_v57 = vsel %vm944_vm8, %v1115_v29, %v1116_v58  ;;  %v1002_v52 = vsel %vm942_vm7, %v1001_v38, %v1000_v50  ;;  %v1127_v4 = vsel %vm939_vm6, %v1125_v39, %v1126_v55  ;;  %v1013_v5 = vsel %vm937_vm5, %v1012_v22, %v2064_v34  ;;  %p1530_p12 = pneg %p1529_p7  ;;  %p1534_p10 = scmp.lt.s32.totalorder %s2240_s28, %s1532_s25 }
 0x1ac   : > { %v1003_v12 = vsel %vm944_vm8, %v1001_v38, %v1002_v52  ;;  %v1129_v45 = vsel %vm942_vm7, %v1128_v46, %v1127_v4  ;;  %v1014_v44 = vsel %vm939_vm6, %v1012_v22, %v1013_v5  ;;  %v1141_v9 = vrot.slane %v2096_v48, 7 }
 0x1ad   : > { %1101 = vrot.lane.b32.xlu1 %v1100_v59, %s1610_s30  ;;  %v1130_v33 = vsel %vm944_vm8, %v1128_v46, %v1129_v45  ;;  %v1016_v6 = vsel %vm942_vm7, %v1015_v56, %v1014_v44  ;;  %v1024_v17 = vrot.slane %v2018_v3, 1  ;;  %v1137_v11 = vsel %vm932_vm3, %v1136_v14, %v1135_v47 }
 0x1ae   : > { %986 = vrot.lane.b32.xlu0 %v985_v7, %s1610_s30  ;;  %v1017_v34 = vsel %vm944_vm8, %v1015_v56, %v1016_v6  ;;  %v1029_v18 = vrot.slane %v2100_v1, 7  ;;  %v1149_v10 = vrot.slane %v2014_v53, 2  ;;  %v1138_v19 = vsel %vm934_vm4, %v1136_v14, %v1137_v11  ;;  %v1161_v6 = vld [vmem:[%s2282_s2] sm:$0xff]  ;;  %s1533_s30 = scalar_lea.vmem %s1532_s25, 512 }
 0x1af   : > { %v1025_v51 = vsel %vm932_vm3, %v1024_v17, %v1023_v60  ;;  %v1152_v23 = vrot.slane %v2070_v20, 1  ;;  %v1038_v24 = vrot.slane %v2018_v3, 2  ;;  %v1139_v16 = vsel %vm937_vm5, %v2070_v20, %v1138_v19  ;;  %p1535_p2 = scmp.lt.s32.totalorder %s1533_s30, %s1527_s23 }
 0x1b0   : > { %v1026_v54 = vsel %vm934_vm4, %v1024_v17, %v1025_v51  ;;  %v1150_v47 = vsel %vm932_vm3, %v1149_v10, %v1148_v61  ;;  %v1041_v53 = vrot.slane %v2074_v36, 1  ;;  %v1140_v60 = vsel %vm939_vm6, %v2070_v20, %v1139_v16 }
 0x1b1   : > { %1118 = vrot.lane.b32.xlu1 %v1117_v57, %s1611_s4  ;;  %v1027_v25 = vsel %vm937_vm5, %v2074_v36, %v1026_v54  ;;  %v1151_v3 = vsel %vm934_vm4, %v1149_v10, %v1150_v47  ;;  %v1039_v15 = vsel %vm932_vm3, %v1038_v24, %v1037_v62  ;;  %v1142_v43 = vsel %vm942_vm7, %v1141_v9, %v1140_v60  ;;  %p1536_p13 = por %p1535_p2, %p1534_p10 }
 0x1b2   : > { %1004 = vrot.lane.b32.xlu0 %v1003_v12, %s1611_s4  ;;  %v1028_v61 = vsel %vm939_vm6, %v2074_v36, %v1027_v25  ;;  %v1153_v29 = vsel %vm937_vm5, %v1152_v23, %v1151_v3  ;;  %v1040_v59 = vsel %vm934_vm4, %v1038_v24, %v1039_v15  ;;  %v1143_v20 = vsel %vm944_vm8, %v1141_v9, %v1142_v43 }
 0x1b3   : > { %v1030_v30 = vsel %vm942_vm7, %v1029_v18, %v1028_v61  ;;  %v1154_v35 = vsel %vm939_vm6, %v1152_v23, %v1153_v29  ;;  %v1042_v49 = vsel %vm937_vm5, %v1041_v53, %v1040_v59  ;;  %v936_v62 = vrot.slane %v2048_v27, 6  ;;  %p1537_p0 = pnand %p1536_p13, %p1530_p12 }
 0x1b4   : > { %v1031_v8 = vsel %vm944_vm8, %v1029_v18, %v1030_v30  ;;  %v1155_v7 = vsel %vm942_vm7, %v2096_v48, %v1154_v35  ;;  %v1043_v36 = vsel %vm939_vm6, %v1041_v53, %v1042_v49  ;;  %v1061_v39 = vrot.slane %v2082_v40, 5 }
 0x1b5   : > { %1131 = vrot.lane.b32.xlu1 %v1130_v33, %s1612_s7  ;;  %v1156_v63 = vsel %vm944_vm8, %v2096_v48, %v1155_v7  ;;  %v1044_v38 = vsel %vm942_vm7, %v2100_v1, %v1043_v36  ;;  %v1056_v27 = vsel %vm932_vm3, %v1055_v2, %v1984_v0  ;;  %v941_v48 = vrot.slane %v2084_v41, 5 }
 0x1b6   : > { %1018 = vrot.lane.b32.xlu0 %v1017_v34, %s1612_s7  ;;  %v1045_v28 = vsel %vm944_vm8, %v2100_v1, %v1044_v38  ;;  %v1057_v42 = vsel %vm934_vm4, %v1055_v2, %v1056_v27  ;;  %v933_v40 = vsel %vm932_vm3, %v931_v13, %v1986_v37 }
 0x1b7   : > { %v1059_v46 = vsel %vm937_vm5, %v1058_v21, %v1057_v42  ;;  %v935_v0 = vsel %vm934_vm4, %v931_v13, %v933_v40 }
 0x1b8   : > { %v1060_v32 = vsel %vm939_vm6, %v1058_v21, %v1059_v46  ;;  %v938_v2 = vsel %vm937_vm5, %v936_v62, %v935_v0 }
 0x1b9   : > { %1144 = vrot.lane.b32.xlu1 %v1143_v20, %s1613_s8  ;;  %v1062_v41 = vsel %vm942_vm7, %v1061_v39, %v1060_v32  ;;  %v940_v37 = vsel %vm939_vm6, %v936_v62, %v938_v2 }
 0x1ba   : > { %1032 = vrot.lane.b32.xlu0 %v1031_v8, %s1613_s8  ;;  %v1063_v1 = vsel %vm944_vm8, %v1061_v39, %v1062_v41  ;;  %v943_v31 = vsel %vm942_vm7, %v941_v48, %v940_v37 }
 0x1bb   : > { %1065 = vst.msk [vmem:[#allocation3 + $0x4] sm:$0xf] %vm947_vm9, %v1063_v1  ;;  %v945_v13 = vsel %vm944_vm8, %v941_v48, %v943_v31 }
 0x1bc   : > { %948 = vst.msk [vmem:[#allocation3] sm:$0xf] %vm947_vm9, %v945_v13 }
 0x1bd   : > { %1157 = vrot.lane.b32.xlu1 %v1156_v63, %s1614_s9 }
 0x1be   : > { %1046 = vrot.lane.b32.xlu0 %v1045_v28, %s1614_s9 }
 0x217   : > { %v1076_v26 = vpop.permute.xlu1 %1075 }
 0x218   : > { %1078 = vst.msk [vmem:[#allocation3 + $0x4] sm:$0xf] %vm961_vm10, %v1076_v26  ;;  %v959_v21 = vpop.permute.xlu0 %958 }
 0x219   : > { %962 = vst.msk [vmem:[#allocation3] sm:$0xf] %vm961_vm10, %v959_v21 }
 0x21b   : > { %v1089_v22 = vpop.permute.xlu1 %1088 }
 0x21c   : > { %1091 = vst.msk [vmem:[#allocation3 + $0x4] sm:$0xf] %vm975_vm11, %v1089_v22  ;;  %v973_v58 = vpop.permute.xlu0 %972 }
 0x21d   : > { %976 = vst.msk [vmem:[#allocation3] sm:$0xf] %vm975_vm11, %v973_v58 }
 0x21f   : > { %v1102_v50 = vpop.permute.xlu1 %1101 }
 0x220   : > { %1104 = vst.msk [vmem:[#allocation3 + $0x4] sm:$0xf] %vm989_vm12, %v1102_v50  ;;  %v987_v55 = vpop.permute.xlu0 %986 }
 0x221   : > { %990 = vst.msk [vmem:[#allocation3] sm:$0xf] %vm989_vm12, %v987_v55 }
 0x223   : > { %v1119_v56 = vpop.permute.xlu1 %1118 }
 0x224   : > { %1121 = vst.msk [vmem:[#allocation3 + $0x4] sm:$0xf] %vm1007_vm13, %v1119_v56  ;;  %v1005_v57 = vpop.permute.xlu0 %1004 }
 0x225   : > { %1008 = vst.msk [vmem:[#allocation3] sm:$0xf] %vm1007_vm13, %v1005_v57 }
 0x227   : > { %v1132_v52 = vpop.permute.xlu1 %1131 }
 0x228   : > { %1134 = vst.msk [vmem:[#allocation3 + $0x4] sm:$0xf] %vm1021_vm14, %v1132_v52  ;;  %v1019_v4 = vpop.permute.xlu0 %1018 }
 0x229   : > { %1022 = vst.msk [vmem:[#allocation3] sm:$0xf] %vm1021_vm14, %v1019_v4 }
 0x22b   : > { %v1145_v5 = vpop.permute.xlu1 %1144 }
 0x22c   : > { %1147 = vst.msk [vmem:[#allocation3 + $0x4] sm:$0xf] %vm1035_vm15, %v1145_v5  ;;  %v1033_v12 = vpop.permute.xlu0 %1032 }
 0x22d   : > { %1036 = vst.msk [vmem:[#allocation3] sm:$0xf] %vm1035_vm15, %v1033_v12 }
 0x22f   : > { %v1158_v45 = vpop.permute.xlu1 %1157 }
 0x230   : > { %1160 = vst.msk [vmem:[#allocation3 + $0x4] sm:$0xf] %vm1049_vm0, %v1158_v45  ;;  %v1047_v44 = vpop.permute.xlu0 %1046 }
 0x231   : > { %1050 = vst.msk [vmem:[#allocation3] sm:$0xf] %vm1049_vm0, %v1047_v44 }
 0x238   : > { %v1162_v14 = vld [vmem:[#allocation3] sm:$0xff] }
 0x239   : > { %v1164_v33 = vcombine.high %v1162_v14, %v1162_v14 }
 0x23b   : > { %1389 = vmatprep.subr.msk.mxu0 %vm1169_vm1, %v1164_v33 }
 0x23c   : > { %1390 = vmatpush1.msk.msra.mxu0 %vm1169_vm1, %v1162_v14 }
 0x23d   : > { %1391 = vmatmul.mubr.msk.f32.vlgmr.msra.gmra.mxu0 %vm1165_vm2, %v1161_v6 }
 0x2fd   : > { %v1240_v9 = vpop.f32.mrf.mxu0 }
 0x2fe   : > { %1245 = vst [vmem:[%s203_s27] sm:$0xff] %v1240_v9 }
 0x2ff   : > { %v1242_v17 = vpop.f32.mrf.mxu0 }
 0x300   : > { %1246 = vst [vmem:[%s203_s27 + $0x8] sm:$0xff] %v1242_v17 }
 0x301   : > { %1540 = shalt.err (!%p1537_p0)
}
 0x302   : > { %s1541_s4 = scalar_lea.hbm %s1260_s17, 256  ;;  %s1545_s8 = scalar_lea.hbm %s2283_s3, 512 }
 0x303   : > { %p1542_p5 = scmp.ne.s32.totalorder %s1260_s17, %s1541_s4  ;;  %p1546_p4 = scmp.lt.s32.totalorder %s1260_s17, %s2283_s3 }
 0x304   : > { %p1547_p6 = scmp.lt.s32.totalorder %s1545_s8, %s1541_s4 }
 0x305   : > { %p1543_p9 = pnand %p1542_p5, %p2299_p11 }
 0x306   : > { %p1548_p8 = por %p1547_p6, %p1546_p4 }
 0x307   : > { %p1544_p1 = pneg %p1543_p9 }
 0x309   : > { %p1549_p3 = pnand %p1548_p8, %p1544_p1 }
 0x30b   : > { %1552 = shalt.err (!%p1549_p3)
}
 0x30c   : > { %1405 = dma.vmem_to_hbm [thread:$0]  (%p2299_p11), %s2240_s28, 256, %s1260_s17, %s1248_s22  }
 0x30d PF: > { %s1274_s11 = sand.u32 1, %s1583_s12   ;;  %p2300_p7 = scmp.ne.s32.totalorder %s2289_s19, 0 }
 0x30e   : > { %p2301_p12 = scmp.ge.s32.totalorder %s1595_s15, 2  ;;  %s1275_s21 = scalar_lea.sflag [#allocation6], %s1274_s11 }
 0x310   : > { %p1416_p10 = pnand %p2301_p12, %p2300_p7 }
 0x312   : > { %p1417_p2 = pneg %p1416_p10 }
 0x314   : > { %1578 = dma.done.wait (%p1417_p2), %s1275_s21, 256  }
 0x315   : > { %1580 = vsyncadd (%p1417_p2), %s1275_s21, 4294967040  ;;  %p17_p13 = scmp.ge.s32.totalorder %s1690_s24, 4   ;;  %s2302_s12 = smov %s1587_s13 }
 0x316   : > { %s2303_s13 = smov %s1591_s14  ;;  %s2304_s14 = smov %s1707_s5 }
 0x317   : > { %s2305_s15 = smov %s1690_s24  ;;  %19 = sbr.rel (!%p17_p13) target bundleno = 6 (0x6), region = 89 }
 0x31c   :  { %1280 = vsyncpa [#allocation5], 1 }
 0x31d   :  { %1282 = vsyncpa [#allocation5 + $0x1], 1 }
 0x31e   :  { %1283 = vsyncpa [#allocation8], 1 }
 0x31f   :  { %1284 = vsyncpa [#allocation6], 1 }
 0x320   :  { %1286 = vsyncpa [#allocation6 + $0x1], 1 }

</bundles_post_ra>
